<compile_context>
chip_gen: v6e
topology: v6e:2x2x1
jax: 0.10.0
libtpu: 0.0.40
codegen_flags: <defaults>
</compile_context>

<pallas_src>
import functools

import jax
import jax.numpy as jnp
import numpy as np
from jax.experimental import pallas as pl
from jax.experimental.pallas import tpu as pltpu


def _attention_kernel(enc_ref, att2_ref, we_ref, wf_ref, awe_ref, alpha_ref, *, p_valid):
    """One batch tile.

    enc_ref:   (TB, Pp, E)  encoder features (bf16 by default; Pp % 8 == 0)
    att2_ref:  (TB, A)      decoder projection with be + bd folded in (f32)
    we_ref:    (E, A)       encoder_att weight, pre-transposed (grid-resident)
    wf_ref:    (1, A)       full_att weight row (bf dropped: softmax shift-invariant)
    awe_ref:   (TB, E)      attention-weighted encoding (output, lane-dense)
    alpha_ref: (TB, Pp)     attention weights (output, pixel axis on lanes)
    """
    TB, Pp, E = enc_ref.shape
    A = we_ref.shape[1]

    enc = enc_ref[...]                                              # (TB, Pp, E)

    # --- encoder projection: one MXU matmul with M = TB*Pp rows (bf16 in, f32 acc).
    # Pp % 8 == 0 so the reshape merges whole sublane tiles (no relayout copy).
    att1 = jnp.dot(enc.reshape(TB * Pp, E), we_ref[...],
                   preferred_element_type=jnp.float32)              # (TB*Pp, A) f32

    # relu(att1 + att2): biases (be + bd) already folded into att2 in the wrapper.
    s = jnp.maximum(att1.reshape(TB, Pp, A) + att2_ref[...][:, None, :], 0.0)

    # --- pixel logits on the VPU (multiply) + XLU lane reduce over A.  Keeping this
    # off the MXU avoids an M=1 weight push per batch and overlaps with the matmul.
    logits = jnp.sum(s * wf_ref[...][None, :, :], axis=-1)          # (TB, Pp) f32

    # Mask pixels added by wrapper-side padding before the softmax.
    if p_valid != Pp:
        pix = jax.lax.broadcasted_iota(jnp.int32, (TB, Pp), 1)
        logits = jnp.where(pix < p_valid, logits, -1e30)

    # --- softmax over pixels (lane axis).
    m = jnp.max(logits, axis=-1, keepdims=True)                     # (TB, 1)
    p = jnp.exp(logits - m)                                         # (TB, Pp)
    denom = jnp.sum(p, axis=-1, keepdims=True)                      # (TB, 1)
    inv = pl.reciprocal(denom, approx=True)                         # EUP slot
    inv = inv * (2.0 - denom * inv)                                 # Newton step -> ~exact f32
    alpha = p * inv                                                 # (TB, Pp)
    alpha_ref[...] = alpha.astype(alpha_ref.dtype)

    # --- attention-weighted encoding: VPU broadcast-multiply + XLU sublane reduce over
    # the pixel axis (one small lane->sublane relayout of alpha).  Keeps the enc tile
    # off the MXU weight path, where M=1 would waste the whole weight load.
    awe = jnp.sum(enc * alpha[:, :, None], axis=1)                  # (TB, E) f32
    awe_ref[...] = awe.astype(awe_ref.dtype)


def _default_block_b(B, Pp, E, A, enc_bytes, vmem_limit):
    """Largest batch tile (multiple of 8) that fits the VMEM budget."""
    # Per-batch-element footprint: double-buffered enc input + the f32 intermediates the
    # kernel materializes (att1 / relu tile, the awe multiply temp) + small double-
    # buffered inputs/outputs.
    per_b = (2 * Pp * E * enc_bytes        # enc tile, 2 pipeline buffers
             + Pp * E * 4                  # enc * alpha f32 temp (awe path)
             + 2 * Pp * A * 4              # att1 + relu'd sum (f32)
             + 2 * A * 4                   # att2, 2 buffers
             + 2 * (E + Pp) * 4)           # awe + alpha outputs, 2 buffers
    fixed = (E + 1) * A * 4                # resident weights (f32 upper bound)
    budget = (vmem_limit * 4) // 5 - fixed
    cap = max(8, ((budget // max(per_b, 1)) // 8) * 8)
    b8 = 8 * pl.cdiv(B, 8)                 # batch rounded up to a sublane multiple
    block_b = min(cap, b8, 64)
    # Keep >= 2 grid steps when the batch allows it, so dimension_semantics=("parallel",)
    # can shard batch tiles across both v7x TensorCores.
    if b8 >= 16:
        block_b = min(block_b, max(8, ((b8 // 2 + 7) // 8) * 8))
    return int(block_b)


def attention_forward(encoder_out, decoder_hidden, params, *,
                      block_b=None, io_dtype=jnp.bfloat16):
    """encoder_out: (B, P, E), decoder_hidden: (B, D).  Returns (awe (B,E), alpha (B,P)).

    io_dtype applies to the HBM-heavy operands (encoder_out, We); bf16 by default.
    All accumulation and the relu/softmax path stay f32.  block_b is rounded up to a
    multiple of 8 (sublane-dense output blocks).
    """
    B, P, E = encoder_out.shape
    A = params["we"].shape[0]

    # Decoder projection + both pre-relu biases hoisted into one fused XLA matmul
    # (an M=1 MXU pass per batch inside the kernel would waste the weight load).
    att2 = (decoder_hidden @ params["wd"].T + params["bd"] + params["be"])
    att2 = att2.astype(jnp.float32)                                  # (B, A)

    we_t = params["we"].T.astype(io_dtype)                           # (E, A)
    wf_row = params["wf"].reshape(1, A).astype(jnp.float32)          # (1, A); bf dropped
    enc = encoder_out.astype(io_dtype)
    enc_bytes = jnp.dtype(io_dtype).itemsize

    # Pixel axis padded to a sublane multiple so in-kernel reshapes stay layout-free;
    # padded logits are masked in the kernel before the softmax.
    # TODO(synk): for P=196 consider rounding to 256 instead (alpha lane dim % 128 == 0).
    Pp = 8 * pl.cdiv(P, 8)

    # VMEM budget per generation (v5e/v6e 128 MiB physical, v7x 64 MiB).
    try:
        vmem_cap = int(pltpu.get_tpu_info().vmem_capacity_bytes)
        vmem_limit = (vmem_cap * 3) // 4          # ~96 MiB on v5e/v6e, ~48 MiB on v7x
    except Exception:
        vmem_limit = 48 * 1024 * 1024

    if block_b is None:
        block_b = _default_block_b(B, Pp, E, A, enc_bytes, vmem_limit)
    else:
        block_b = max(8, 8 * pl.cdiv(int(block_b), 8))

    nb = pl.cdiv(B, block_b)
    Bp = nb * block_b

    if Bp != B or Pp != P:
        enc = jnp.pad(enc, ((0, Bp - B), (0, Pp - P), (0, 0)))
    if Bp != B:
        att2 = jnp.pad(att2, ((0, Bp - B), (0, 0)))

    cost = pl.CostEstimate(
        flops=int(2 * Bp * Pp * E * A + 2 * Bp * Pp * A + 3 * Bp * Pp * E),
        transcendentals=int(Bp * Pp + Bp),
        bytes_accessed=int(Bp * Pp * E * enc_bytes + E * A * enc_bytes
                           + (1 + Bp) * A * 4 + Bp * (E + Pp) * 4),
    )

    def run(single_buffered_weights):
        # Weights have a constant index_map; single-buffer them to save VMEM.
        wkw = dict(pipeline_mode=pl.Buffered(1)) if single_buffered_weights else {}
        kernel = functools.partial(_attention_kernel, p_valid=P)
        call = pl.pallas_call(
            kernel,
            out_shape=(jax.ShapeDtypeStruct((Bp, E), jnp.float32),
                       jax.ShapeDtypeStruct((Bp, Pp), jnp.float32)),
            grid_spec=pltpu.PrefetchScalarGridSpec(
                num_scalar_prefetch=0,
                grid=(nb,),
                in_specs=[
                    pl.BlockSpec((block_b, Pp, E), lambda i: (i, 0, 0)),    # enc tile
                    pl.BlockSpec((block_b, A), lambda i: (i, 0)),           # att2 tile
                    pl.BlockSpec((E, A), lambda i: (0, 0), **wkw),          # We^T (resident)
                    pl.BlockSpec((1, A), lambda i: (0, 0), **wkw),          # wf (resident)
                ],
                out_specs=[
                    pl.BlockSpec((block_b, E), lambda i: (i, 0)),           # awe (lane-dense)
                    pl.BlockSpec((block_b, Pp), lambda i: (i, 0)),          # alpha (pixels on lanes)
                ],
            ),
            compiler_params=pltpu.CompilerParams(
                dimension_semantics=("parallel",),       # batch tiles: megacore-shardable
                vmem_limit_bytes=int(vmem_limit)),
            cost_estimate=cost,
        )
        return call(enc, att2, we_t, wf_row)

    try:
        awe_full, alpha_full = jax.block_until_ready(run(True))
    except Exception:
        # pl.Buffered(1) not supported by this jax/backend combo: fall back to default
        # double-buffered weight blocks (correctness unaffected, slightly more VMEM).
        awe_full, alpha_full = run(False)

    return awe_full[:B], alpha_full[:B, :P]


def _xavier_uniform(key, out_dim, in_dim):
    bound = np.sqrt(6.0 / (in_dim + out_dim))
    return jax.random.uniform(key, (out_dim, in_dim), jnp.float32, -bound, bound)


def make_params(key, encoder_dim, decoder_dim, attention_dim):
    k1, k2, k3 = jax.random.split(key, 3)
    return {
        "we": _xavier_uniform(k1, attention_dim, encoder_dim),   # encoder_att.weight (A, E)
        "be": jnp.zeros((attention_dim,), jnp.float32),
        "wd": _xavier_uniform(k2, attention_dim, decoder_dim),   # decoder_att.weight (A, D)
        "bd": jnp.zeros((attention_dim,), jnp.float32),
        "wf": _xavier_uniform(k3, 1, attention_dim),             # full_att.weight (1, A)
        "bf": jnp.zeros((1,), jnp.float32),
    }


def attention_reference(encoder_out, decoder_hidden, params, precision=None):
    att1 = jnp.einsum("bpe,ae->bpa", encoder_out, params["we"],
                      precision=precision) + params["be"]
    att2 = jnp.einsum("bd,ad->ba", decoder_hidden, params["wd"],
                      precision=precision) + params["bd"]
    s = jnp.maximum(att1 + att2[:, None, :], 0.0)
    att = jnp.einsum("bpa,a->bp", s, params["wf"][0], precision=precision) + params["bf"][0]
    alpha = jax.nn.softmax(att, axis=1)
    awe = jnp.einsum("bpe,bp->be", encoder_out, alpha, precision=precision)
    return awe, alpha


if __name__ == "__main__":
    # Small shapes consistent with the module: B=12 images, P=12 pixels, E=D=A=32.
    # B and P exercise both padding paths (batch -> 16 rows, pixels -> 16 with masking);
    # block_b heuristic yields 8 -> a 2-step grid.
    B, P, E, D, A = 12, 12, 32, 32, 32

    root = jax.random.PRNGKey(0)
    k_enc, k_dec, k_params = jax.random.split(root, 3)

    encoder_out = jax.random.normal(k_enc, (B, P, E), jnp.float32)
    decoder_hidden = jax.random.normal(k_dec, (B, D), jnp.float32)
    params = make_params(k_params, E, D, A)

    awe, alpha = attention_forward(encoder_out, decoder_hidden, params)
    jax.block_until_ready((awe, alpha))

    # Tight check: the kernel feeds bf16-rounded enc/We to the MXU with f32 accumulation,
    # so compare against an f32 reference given the same bf16-rounded operands.
    enc_q = encoder_out.astype(jnp.bfloat16).astype(jnp.float32)
    params_q = dict(params)
    params_q["we"] = params["we"].astype(jnp.bfloat16).astype(jnp.float32)
    awe_q, alpha_q = attention_reference(enc_q, decoder_hidden, params_q,
                                         precision=jax.lax.Precision.HIGHEST)
    assert np.allclose(np.asarray(awe), np.asarray(awe_q), atol=1e-3, rtol=1e-3)
    assert np.allclose(np.asarray(alpha), np.asarray(alpha_q), atol=1e-3, rtol=1e-3)

    # Loose end-to-end sanity vs the pure-f32 reference (bf16 I/O error budget).
    awe_f, alpha_f = attention_reference(encoder_out, decoder_hidden, params)
    assert np.allclose(np.asarray(awe), np.asarray(awe_f), atol=1e-1, rtol=1e-1)
    assert np.allclose(np.asarray(alpha), np.asarray(alpha_f), atol=5e-2, rtol=5e-2)
    assert np.allclose(np.asarray(alpha).sum(axis=1), 1.0, atol=1e-5)

    print("KERNEL_OK")
</pallas_src>

<mosaic_0001>
module attributes {stable_mosaic.version = 11 : i64} {
  func.func @_attention_kernel(%arg0: i32, %arg1: memref<8x16x32xbf16, #tpu.memory_space<vmem>>, %arg2: memref<8x32xf32, #tpu.memory_space<vmem>>, %arg3: memref<32x32xbf16, #tpu.memory_space<vmem>>, %arg4: memref<1x32xf32, #tpu.memory_space<vmem>>, %arg5: memref<8x32xf32, #tpu.memory_space<vmem>>, %arg6: memref<8x16xf32, #tpu.memory_space<vmem>>) attributes {dimension_semantics = [#tpu.dimension_semantics<parallel>], iteration_bounds = array<i64: 2>, scalar_prefetch = 0 : i64, scratch_operands = 0 : i64, tpu.core_type = #tpu.core_type<tc>, window_params = [{transform_indices = @transform_0, window_bounds = array<i64: 8, 16, 32>}, {transform_indices = @transform_1, window_bounds = array<i64: 8, 32>}, {pipeline_mode = #tpu.pipeline_mode<synchronous>, transform_indices = @transform_2, window_bounds = array<i64: 32, 32>}, {pipeline_mode = #tpu.pipeline_mode<synchronous>, transform_indices = @transform_3, window_bounds = array<i64: 1, 32>}, {transform_indices = @transform_4, window_bounds = array<i64: 8, 32>}, {transform_indices = @transform_5, window_bounds = array<i64: 8, 16>}]} {
    %c0 = arith.constant 0 : index
    %c0_0 = arith.constant 0 : index
    %c0_1 = arith.constant 0 : index
    %0 = vector.load %arg1[%c0, %c0_0, %c0_1] : memref<8x16x32xbf16, #tpu.memory_space<vmem>>, vector<8x16x32xbf16>
    %1 = vector.shape_cast %0 : vector<8x16x32xbf16> to vector<128x32xbf16>
    %c0_2 = arith.constant 0 : index
    %c0_3 = arith.constant 0 : index
    %2 = vector.load %arg3[%c0_2, %c0_3] : memref<32x32xbf16, #tpu.memory_space<vmem>>, vector<32x32xbf16>
    %cst = arith.constant dense<0.000000e+00> : vector<128x32xf32>
    %3 = tpu.matmul %1, %2, %cst {dimension_numbers = #tpu.dot_dimension_numbers<[1], [0], [0], [1], [0, 0, 1, 1], [], []>} : vector<128x32xbf16>, vector<32x32xbf16>, vector<128x32xf32> -> vector<128x32xf32>
    %4 = vector.shape_cast %3 : vector<128x32xf32> to vector<8x16x32xf32>
    %c0_4 = arith.constant 0 : index
    %c0_5 = arith.constant 0 : index
    %5 = vector.load %arg2[%c0_4, %c0_5] : memref<8x32xf32, #tpu.memory_space<vmem>>, vector<8x32xf32>
    %6 = vector.shape_cast %5 : vector<8x32xf32> to vector<8x1x32xf32>
    %7 = vector.broadcast %6 : vector<8x1x32xf32> to vector<8x16x32xf32>
    %8 = arith.addf %4, %7 : vector<8x16x32xf32>
    %cst_6 = arith.constant 0.000000e+00 : f32
    %9 = vector.broadcast %cst_6 : f32 to vector<8x16x32xf32>
    %10 = arith.maximumf %8, %9 : vector<8x16x32xf32>
    %c0_7 = arith.constant 0 : index
    %c0_8 = arith.constant 0 : index
    %11 = vector.load %arg4[%c0_7, %c0_8] : memref<1x32xf32, #tpu.memory_space<vmem>>, vector<1x32xf32>
    %12 = vector.shape_cast %11 : vector<1x32xf32> to vector<1x1x32xf32>
    %13 = vector.broadcast %12 : vector<1x1x32xf32> to vector<8x16x32xf32>
    %14 = arith.mulf %10, %13 : vector<8x16x32xf32>
    %cst_9 = arith.constant dense<0.000000e+00> : vector<8x16xf32>
    %15 = vector.multi_reduction <add>, %14, %cst_9 [2] : vector<8x16x32xf32> to vector<8x16xf32>
    %16 = tpu.iota {dimensions = array<i32: 1>} : vector<8x16xi32>
    %c12_i32 = arith.constant 12 : i32
    %17 = vector.broadcast %c12_i32 : i32 to vector<8x16xi32>
    %18 = arith.cmpi slt, %16, %17 : vector<8x16xi32>
    %cst_10 = arith.constant -1.000000e+30 : f32
    %19 = vector.broadcast %cst_10 : f32 to vector<8x16xf32>
    %20 = arith.select %18, %15, %19 : vector<8x16xi1>, vector<8x16xf32>
    %cst_11 = arith.constant dense<0xFF800000> : vector<8xf32>
    %21 = vector.multi_reduction <maximumf>, %20, %cst_11 [1] : vector<8x16xf32> to vector<8xf32>
    %22 = vector.shape_cast %21 : vector<8xf32> to vector<8x1xf32>
    %23 = vector.broadcast %22 : vector<8x1xf32> to vector<8x16xf32>
    %24 = arith.subf %20, %23 : vector<8x16xf32>
    %25 = math.exp %24 : vector<8x16xf32>
    %cst_12 = arith.constant dense<0.000000e+00> : vector<8xf32>
    %26 = vector.multi_reduction <add>, %25, %cst_12 [1] : vector<8x16xf32> to vector<8xf32>
    %27 = vector.shape_cast %26 : vector<8xf32> to vector<8x1xf32>
    %28 = tpu.reciprocal %27 {approx = true} : vector<8x1xf32> -> vector<8x1xf32>
    %29 = arith.mulf %27, %28 : vector<8x1xf32>
    %cst_13 = arith.constant 2.000000e+00 : f32
    %30 = vector.broadcast %cst_13 : f32 to vector<8x1xf32>
    %31 = arith.subf %30, %29 : vector<8x1xf32>
    %32 = arith.mulf %28, %31 : vector<8x1xf32>
    %33 = vector.broadcast %32 : vector<8x1xf32> to vector<8x16xf32>
    %34 = arith.mulf %25, %33 : vector<8x16xf32>
    %c0_14 = arith.constant 0 : index
    %c0_15 = arith.constant 0 : index
    %35 = vector.load %arg6[%c0_14, %c0_15] : memref<8x16xf32, #tpu.memory_space<vmem>>, vector<8x16xf32>
    tpu.vector_store %arg6[%c0_14, %c0_15], %34 {strides = array<i32>} : memref<8x16xf32, #tpu.memory_space<vmem>>, vector<8x16xf32>,
    %36 = vector.shape_cast %34 : vector<8x16xf32> to vector<8x16x1xf32>
    %37 = arith.extf %0 : vector<8x16x32xbf16> to vector<8x16x32xf32>
    %38 = vector.broadcast %36 : vector<8x16x1xf32> to vector<8x16x32xf32>
    %39 = arith.mulf %37, %38 : vector<8x16x32xf32>
    %cst_16 = arith.constant dense<0.000000e+00> : vector<8x32xf32>
    %40 = vector.multi_reduction <add>, %39, %cst_16 [1] : vector<8x16x32xf32> to vector<8x32xf32>
    %c0_17 = arith.constant 0 : index
    %c0_18 = arith.constant 0 : index
    %41 = vector.load %arg5[%c0_17, %c0_18] : memref<8x32xf32, #tpu.memory_space<vmem>>, vector<8x32xf32>
    tpu.vector_store %arg5[%c0_17, %c0_18], %40 {strides = array<i32>} : memref<8x32xf32, #tpu.memory_space<vmem>>, vector<8x32xf32>,
    return
  }
  func.func @transform_0(%arg0: i32) -> (i32, i32, i32) {
    %c0_i32 = arith.constant 0 : i32
    %c0_i32_0 = arith.constant 0 : i32
    %c0_i32_1 = arith.constant 0 : i32
    return %arg0, %c0_i32, %c0_i32_0 : i32, i32, i32
  }
  func.func @transform_1(%arg0: i32) -> (i32, i32) {
    %c0_i32 = arith.constant 0 : i32
    %c0_i32_0 = arith.constant 0 : i32
    return %arg0, %c0_i32 : i32, i32
  }
  func.func @transform_2(%arg0: i32) -> (i32, i32) {
    %c0_i32 = arith.constant 0 : i32
    %c0_i32_0 = arith.constant 0 : i32
    %c0_i32_1 = arith.constant 0 : i32
    return %c0_i32, %c0_i32_0 : i32, i32
  }
  func.func @transform_3(%arg0: i32) -> (i32, i32) {
    %c0_i32 = arith.constant 0 : i32
    %c0_i32_0 = arith.constant 0 : i32
    %c0_i32_1 = arith.constant 0 : i32
    return %c0_i32, %c0_i32_0 : i32, i32
  }
  func.func @transform_4(%arg0: i32) -> (i32, i32) {
    %c0_i32 = arith.constant 0 : i32
    %c0_i32_0 = arith.constant 0 : i32
    return %arg0, %c0_i32 : i32, i32
  }
  func.func @transform_5(%arg0: i32) -> (i32, i32) {
    %c0_i32 = arith.constant 0 : i32
    %c0_i32_0 = arith.constant 0 : i32
    return %arg0, %c0_i32 : i32, i32
  }
}

module attributes {stable_mosaic.version = 11 : i64} {
  func.func @_attention_kernel(%arg0: i32, %arg1: memref<8x16x32xbf16, #tpu.memory_space<vmem>>, %arg2: memref<8x32xf32, #tpu.memory_space<vmem>>, %arg3: memref<32x32xbf16, #tpu.memory_space<vmem>>, %arg4: memref<1x32xf32, #tpu.memory_space<vmem>>, %arg5: memref<8x32xf32, #tpu.memory_space<vmem>>, %arg6: memref<8x16xf32, #tpu.memory_space<vmem>>) attributes {dimension_semantics = [#tpu.dimension_semantics<parallel>], iteration_bounds = array<i64: 2>, scalar_prefetch = 0 : i64, scratch_operands = 0 : i64, tpu.core_type = #tpu.core_type<tc>, window_params = [{transform_indices = @transform_0, window_bounds = array<i64: 8, 16, 32>}, {transform_indices = @transform_1, window_bounds = array<i64: 8, 32>}, {pipeline_mode = #tpu.pipeline_mode<synchronous>, transform_indices = @transform_2, window_bounds = array<i64: 32, 32>}, {pipeline_mode = #tpu.pipeline_mode<synchronous>, transform_indices = @transform_3, window_bounds = array<i64: 1, 32>}, {transform_indices = @transform_4, window_bounds = array<i64: 8, 32>}, {transform_indices = @transform_5, window_bounds = array<i64: 8, 16>}]} {
    %c0 = arith.constant 0 : index
    %c0_0 = arith.constant 0 : index
    %c0_1 = arith.constant 0 : index
    %0 = vector.load %arg1[%c0, %c0_0, %c0_1] : memref<8x16x32xbf16, #tpu.memory_space<vmem>>, vector<8x16x32xbf16>
    %1 = vector.shape_cast %0 : vector<8x16x32xbf16> to vector<128x32xbf16>
    %c0_2 = arith.constant 0 : index
    %c0_3 = arith.constant 0 : index
    %2 = vector.load %arg3[%c0_2, %c0_3] : memref<32x32xbf16, #tpu.memory_space<vmem>>, vector<32x32xbf16>
    %cst = arith.constant dense<0.000000e+00> : vector<128x32xf32>
    %3 = tpu.matmul %1, %2, %cst {dimension_numbers = #tpu.dot_dimension_numbers<[1], [0], [0], [1], [0, 0, 1, 1], [], []>} : vector<128x32xbf16>, vector<32x32xbf16>, vector<128x32xf32> -> vector<128x32xf32>
    %4 = vector.shape_cast %3 : vector<128x32xf32> to vector<8x16x32xf32>
    %c0_4 = arith.constant 0 : index
    %c0_5 = arith.constant 0 : index
    %5 = vector.load %arg2[%c0_4, %c0_5] : memref<8x32xf32, #tpu.memory_space<vmem>>, vector<8x32xf32>
    %6 = vector.shape_cast %5 : vector<8x32xf32> to vector<8x1x32xf32>
    %7 = vector.broadcast %6 : vector<8x1x32xf32> to vector<8x16x32xf32>
    %8 = arith.addf %4, %7 : vector<8x16x32xf32>
    %cst_6 = arith.constant 0.000000e+00 : f32
    %9 = vector.broadcast %cst_6 : f32 to vector<8x16x32xf32>
    %10 = arith.maximumf %8, %9 : vector<8x16x32xf32>
    %c0_7 = arith.constant 0 : index
    %c0_8 = arith.constant 0 : index
    %11 = vector.load %arg4[%c0_7, %c0_8] : memref<1x32xf32, #tpu.memory_space<vmem>>, vector<1x32xf32>
    %12 = vector.shape_cast %11 : vector<1x32xf32> to vector<1x1x32xf32>
    %13 = vector.broadcast %12 : vector<1x1x32xf32> to vector<8x16x32xf32>
    %14 = arith.mulf %10, %13 : vector<8x16x32xf32>
    %cst_9 = arith.constant dense<0.000000e+00> : vector<8x16xf32>
    %15 = vector.multi_reduction <add>, %14, %cst_9 [2] : vector<8x16x32xf32> to vector<8x16xf32>
    %16 = tpu.iota {dimensions = array<i32: 1>} : vector<8x16xi32>
    %c12_i32 = arith.constant 12 : i32
    %17 = vector.broadcast %c12_i32 : i32 to vector<8x16xi32>
    %18 = arith.cmpi slt, %16, %17 : vector<8x16xi32>
    %cst_10 = arith.constant -1.000000e+30 : f32
    %19 = vector.broadcast %cst_10 : f32 to vector<8x16xf32>
    %20 = arith.select %18, %15, %19 : vector<8x16xi1>, vector<8x16xf32>
    %cst_11 = arith.constant dense<0xFF800000> : vector<8xf32>
    %21 = vector.multi_reduction <maximumf>, %20, %cst_11 [1] : vector<8x16xf32> to vector<8xf32>
    %22 = vector.shape_cast %21 : vector<8xf32> to vector<8x1xf32>
    %23 = vector.broadcast %22 : vector<8x1xf32> to vector<8x16xf32>
    %24 = arith.subf %20, %23 : vector<8x16xf32>
    %25 = math.exp %24 : vector<8x16xf32>
    %cst_12 = arith.constant dense<0.000000e+00> : vector<8xf32>
    %26 = vector.multi_reduction <add>, %25, %cst_12 [1] : vector<8x16xf32> to vector<8xf32>
    %27 = vector.shape_cast %26 : vector<8xf32> to vector<8x1xf32>
    %28 = tpu.reciprocal %27 {approx = true} : vector<8x1xf32> -> vector<8x1xf32>
    %29 = arith.mulf %27, %28 : vector<8x1xf32>
    %cst_13 = arith.constant 2.000000e+00 : f32
    %30 = vector.broadcast %cst_13 : f32 to vector<8x1xf32>
    %31 = arith.subf %30, %29 : vector<8x1xf32>
    %32 = arith.mulf %28, %31 : vector<8x1xf32>
    %33 = vector.broadcast %32 : vector<8x1xf32> to vector<8x16xf32>
    %34 = arith.mulf %25, %33 : vector<8x16xf32>
    %c0_14 = arith.constant 0 : index
    %c0_15 = arith.constant 0 : index
    %35 = vector.load %arg6[%c0_14, %c0_15] : memref<8x16xf32, #tpu.memory_space<vmem>>, vector<8x16xf32>
    tpu.vector_store %arg6[%c0_14, %c0_15], %34 {strides = array<i32>} : memref<8x16xf32, #tpu.memory_space<vmem>>, vector<8x16xf32>,
    %36 = vector.shape_cast %34 : vector<8x16xf32> to vector<8x16x1xf32>
    %37 = arith.extf %0 : vector<8x16x32xbf16> to vector<8x16x32xf32>
    %38 = vector.broadcast %36 : vector<8x16x1xf32> to vector<8x16x32xf32>
    %39 = arith.mulf %37, %38 : vector<8x16x32xf32>
    %cst_16 = arith.constant dense<0.000000e+00> : vector<8x32xf32>
    %40 = vector.multi_reduction <add>, %39, %cst_16 [1] : vector<8x16x32xf32> to vector<8x32xf32>
    %c0_17 = arith.constant 0 : index
    %c0_18 = arith.constant 0 : index
    %41 = vector.load %arg5[%c0_17, %c0_18] : memref<8x32xf32, #tpu.memory_space<vmem>>, vector<8x32xf32>
    tpu.vector_store %arg5[%c0_17, %c0_18], %40 {strides = array<i32>} : memref<8x32xf32, #tpu.memory_space<vmem>>, vector<8x32xf32>,
    return
  }
  func.func @transform_0(%arg0: i32) -> (i32, i32, i32) {
    %c0_i32 = arith.constant 0 : i32
    %c0_i32_0 = arith.constant 0 : i32
    %c0_i32_1 = arith.constant 0 : i32
    return %arg0, %c0_i32, %c0_i32_0 : i32, i32, i32
  }
  func.func @transform_1(%arg0: i32) -> (i32, i32) {
    %c0_i32 = arith.constant 0 : i32
    %c0_i32_0 = arith.constant 0 : i32
    return %arg0, %c0_i32 : i32, i32
  }
  func.func @transform_2(%arg0: i32) -> (i32, i32) {
    %c0_i32 = arith.constant 0 : i32
    %c0_i32_0 = arith.constant 0 : i32
    %c0_i32_1 = arith.constant 0 : i32
    return %c0_i32, %c0_i32_0 : i32, i32
  }
  func.func @transform_3(%arg0: i32) -> (i32, i32) {
    %c0_i32 = arith.constant 0 : i32
    %c0_i32_0 = arith.constant 0 : i32
    %c0_i32_1 = arith.constant 0 : i32
    return %c0_i32, %c0_i32_0 : i32, i32
  }
  func.func @transform_4(%arg0: i32) -> (i32, i32) {
    %c0_i32 = arith.constant 0 : i32
    %c0_i32_0 = arith.constant 0 : i32
    return %arg0, %c0_i32 : i32, i32
  }
  func.func @transform_5(%arg0: i32) -> (i32, i32) {
    %c0_i32 = arith.constant 0 : i32
    %c0_i32_0 = arith.constant 0 : i32
    return %arg0, %c0_i32 : i32, i32
  }
}

</mosaic_0001>

<bundles_post_ra>
// kernel: tpu_custom_call.1
= control target key start
LH: loop header
LB: loop body
LE: loop exit
PB: predicated region body
PF: predicated region fallthrough
CT: control target
= control target key end

     0   :  { %s2007_s0 = inlined_call_operand.hbm [shape: bf16[16,16,32], index: 0, kind: input, shape index: {}]   ;;  %s2008_s1 = inlined_call_operand.hbm [shape: f32[16,32], index: 1, kind: input, shape index: {}]   ;;  %s2009_s2 = inlined_call_operand.hbm [shape: bf16[32,32], index: 2, kind: input, shape index: {}]   ;;  %s2010_s3 = inlined_call_operand.vmem [shape: f32[1,32], index: 3, kind: input, shape index: {}]   ;;  %s2011_s4 = inlined_call_operand.hbm [shape: f32[16,32], index: 4, kind: output, shape index: {0}]   ;;  %s2012_s5 = inlined_call_operand.hbm [shape: f32[16,16], index: 5, kind: output, shape index: {1}]  }
   0x1   :  { %2017 = sst [smem:[#allocation17_spill]] %s2007_s0 }
   0x2   :  { %2018 = sst [smem:[#allocation18_spill]] %s2009_s2 }
   0x3   :  { %11 = vsyncpa [#allocation3], 0 }
   0x4   :  { %13 = vsyncpa [#allocation3 + $0x1], 0 }
   0x5   :  { %14 = vsyncpa [#allocation6], 0 }
   0x6   :  { %16 = vsyncpa [#allocation6 + $0x1], 0 }
   0x7   :  { %17 = vsyncpa [#allocation4], 0 }
   0x8   :  { %19 = vsyncpa [#allocation4 + $0x1], 0 }
   0x9   :  { %20 = vsyncpa [#allocation10], 0 }
   0xa   :  { %22 = vsyncpa [#allocation10 + $0x1], 0  ;;  %s1590_s18 = smov 0   ;;  %s1592_s19 = smov 0  }
   0xb   :  { %s1594_s20 = smov 0   ;;  %s1596_s21 = smov 0  }
   0xc LB: > { %s1611_s22 = sadd.s32 4294967295, %s1550_s21   ;;  %s1196_s23 = sadd.s32 4294967294, %s1550_s21   ;;  %s1550_s21 = sphi %s1596_s21, %s2042_s21   ;;  %s1546_s20 = sphi %s1594_s20, %s2041_s20   ;;  %s1542_s19 = sphi %s1592_s19, %s2040_s19   ;;  %s1538_s18 = sphi %s1590_s18, %s2039_s18  }
   0xd   : > { %p48_p0 = scmp.ne.s32.totalorder %s1542_s19, %s1538_s18  ;;  %p2013_p1 = scmp.eq.s32.totalorder %s1611_s22, 0 }
   0xe   : > { %p146_p3 = scmp.eq.s32.totalorder %s1196_s23, 1  ;;  %p1197_p5 = scmp.ge.s32.totalorder %s1550_s21, 1 }
   0xf   : > { %p1620_p4 = por %p2013_p1, %p48_p0  ;;  %p179_p7 = scmp.lt.s32.totalorder %s1550_s21, 3 }
  0x10   : > { %p1625_p6 = por %p146_p3, %p48_p0  ;;  %s1552_s27 = smov [#allocation7]  }
  0x11   : > { %s2019_s24 = scalar_select %p1620_p4, 1, 0 }
  0x12   : > { %s2020_s25 = scalar_select %p1625_p6, 1, 0 }
  0x13   : > { %p1630_p8 = pnand %p1197_p5, %p179_p7  ;;  %s191_s28 = sshll.u32 %s1552_s27, 4  ;;  %s192_s28 = int_to_ptr.vmem [resolvable:$true] %s191_s28 }
  0x14   : > { %s1644_s30 = sadd.s32 1, %s1550_s21   ;;  %s35_s6 = sadd.s32 1, %s1546_s20 }
  0x15   : > { %s2021_s26 = scalar_select %p1630_p8, 1, 0 }
  0x16   : > { %p1285_p9 = pneg %p1630_p8  ;;  %s32_s7 = ssub.s32 %s1550_s21, %s1644_s30 }
  0x17   : > { %s1377_s8 = scalar_lea.vmem %s192_s28, 256  ;;  %p1385_p5 = scmp.lt.s32.totalorder %s192_s28, %s192_s28 }
  0x18   : > { %p1639_p11 = pnand %p1285_p9, %p2013_p1  ;;  %p1378_p13 = scmp.ne.s32.totalorder %s192_s28, %s1377_s8 }
  0x19   : > { %p1386_p7 = scmp.lt.s32.totalorder %s1377_s8, %s1377_s8 }
  0x1a   : > { %p1368_p12 = pneg %p1639_p11 }
  0x1b   : > { %p1387_p10 = por %p1386_p7, %p1385_p5 }
  0x1c   : > { %p1380_p0 = pnand %p1378_p13, %p1368_p12 }
  0x1e   : > { %p1381_p3 = pneg %p1380_p0 }
  0x20   : > { %p1388_p2 = pnand %p1387_p10, %p1381_p3 }
  0x22   : > { %1391 = shalt.err (!%p1388_p2)
}
  0x23   : > { %s1553_s9 = smov 64   ;;  %s1554_s10 = smov 4  }
  0x24   : > { %s2023_s2 = sld [smem:[#allocation18_spill]]  ;;  %p33_p2 = scmp.eq.s32.totalorder %s32_s7, 0 }
  0x25   : > { %p42_p9 = scmp.ne.s32.totalorder %s1546_s20, %s1542_s19  ;;  %p43_p10 = scmp.eq.s32.totalorder %s1550_s21, 0 }
  0x26   : > { %p1304_p12 = scmp.lt.s32.totalorder %s1550_s21, 2  ;;  %p2025_p0 = scmp.eq.s32.totalorder %s1611_s22, 1 }
  0x27   : > { %s1664_s13 = scalar_select %p33_p2, %s1546_s20, %s35_s6  }
  0x28   : > { %p44_p13 = por %p43_p10, %p42_p9  ;;  %p1668_p3 = por %p2025_p0, %p42_p9 }
  0x29   : > { %2024 = sst [smem:[#allocation16_spill]] %s1664_s13  ;;  %s1673_s15 = sand.u32 1, %s1546_s20  }
  0x2a   : > { %1288 = dma.hbm_to_vmem [thread:$0]  (!%p1639_p11), %s2023_s2, 256, %s192_s28, [#allocation6], %s1553_s9, %s1553_s9, %s1554_s10  }
  0x2b   : > { %s2026_s14 = scalar_select %p1668_p3, 1, 0 }
  0x2c   : > { %s1238_s16 = sshll.u32 %s1550_s21, 10  ;;  %s1200_s17 = sshll.u32 %s1673_s15, 6 }
  0x2d   : > { %s2027_s0 = sld [smem:[#allocation17_spill]]  ;;  %s212_s29 = scalar_lea.vmem [#allocation2], %s1200_s17 }
  0x2e   : > { %s220_s6 = sshll.u32 %s212_s29, 4  ;;  %p1682_p11 = pnand %p1304_p12, %p44_p13  ;;  %s1686_s6 = int_to_ptr.vmem [resolvable:$true] %s220_s6 }
  0x30   : > { %p1394_p7 = pneg %p1682_p11 }
  0x33   : > { %s1680_s28 = scalar_lea.hbm %s2027_s0, %s1238_s16  ;;  %s1397_s23 = scalar_lea.hbm %s2027_s0, 2048 }
  0x34   : > { %s1392_s12 = scalar_lea.hbm %s1680_s28, 1024  ;;  %p1398_p10 = scmp.lt.s32.totalorder %s1680_s28, %s2027_s0 }
  0x35   : > { %p1393_p5 = scmp.ne.s32.totalorder %s1680_s28, %s1392_s12  ;;  %p1399_p12 = scmp.lt.s32.totalorder %s1397_s23, %s1392_s12 }
  0x37   : > { %p1395_p2 = pnand %p1394_p7, %p1393_p5  ;;  %p1400_p13 = por %p1399_p12, %p1398_p10 }
  0x39   : > { %p1396_p9 = pneg %p1395_p2 }
  0x3b   : > { %p1401_p0 = pnand %p1400_p13, %p1396_p9 }
  0x3d   : > { %1404 = shalt.err (!%p1401_p0)
}
  0x3e   : > { %s1405_s8 = scalar_lea.vmem %s1686_s6, 1024  ;;  %s1555_s16 = smov [#allocation2]  }
  0x3f   : > { %p1406_p1 = scmp.ne.s32.totalorder %s1686_s6, %s1405_s8  ;;  %s1410_s17 = sshll.u32 %s1555_s16, 4  ;;  %s1411_s17 = int_to_ptr.vmem [resolvable:$false] %s1410_s17 }
  0x40   : > { %s1412_s11 = scalar_lea.vmem %s1411_s17, 2048  ;;  %p1413_p6 = scmp.lt.s32.totalorder %s1686_s6, %s1411_s17 }
  0x41   : > { %p1408_p5 = pnand %p1406_p1, %p1394_p7  ;;  %p1414_p3 = scmp.lt.s32.totalorder %s1412_s11, %s1405_s8 }
  0x43   : > { %p1409_p2 = pneg %p1408_p5  ;;  %p1415_p4 = por %p1414_p3, %p1413_p6 }
  0x45   : > { %p1416_p10 = pnand %p1415_p4, %p1409_p2 }
  0x47   : > { %1419 = shalt.err (!%p1416_p10)
}
  0x48   : > { %s2029_s12 = scalar_lea.sflag [#allocation3], %s1673_s15  ;;  %s1204_s23 = sshll.u32 %s1673_s15, 3 }
  0x49   : > { %1292 = dma.hbm_to_vmem [thread:$0]  (!%p1682_p11), %s1680_s28, 1024, %s1686_s6, %s2029_s12, %s1553_s9, %s1553_s9, %s1554_s10  }
  0x4a   : > { %s1205_s27 = sshll.u32 %s1550_s21, 7  ;;  %s234_s16 = scalar_lea.vmem [#allocation5], %s1204_s23 }
  0x4b   : > { %s1724_s29 = scalar_lea.hbm %s2008_s1, %s1205_s27  ;;  %s241_s17 = sshll.u32 %s234_s16, 4  ;;  %s242_s17 = int_to_ptr.vmem [resolvable:$true] %s241_s17 }
  0x4c   : > { %s2030_s0 = sand.u32 1, %s1550_s21   ;;  %s1420_s13 = scalar_lea.hbm %s1724_s29, 128 }
  0x4d   : > { %s231_s2 = scalar_lea.sflag [#allocation6], %s2030_s0  ;;  %p1421_p1 = scmp.ne.s32.totalorder %s1724_s29, %s1420_s13 }
  0x4e   : > { %s1425_s15 = scalar_lea.hbm %s2008_s1, 256  ;;  %p1426_p3 = scmp.lt.s32.totalorder %s1724_s29, %s2008_s1 }
  0x4f   : > { %p1423_p4 = pnand %p1421_p1, %p1394_p7  ;;  %p1427_p9 = scmp.lt.s32.totalorder %s1425_s15, %s1420_s13 }
  0x51   : > { %p1424_p6 = pneg %p1423_p4  ;;  %p1428_p12 = por %p1427_p9, %p1426_p3 }
  0x53   : > { %p1429_p13 = pnand %p1428_p12, %p1424_p6 }
  0x55   : > { %1432 = shalt.err (!%p1429_p13)
}
  0x56   : > { %s1433_s12 = scalar_lea.vmem %s242_s17, 128  ;;  %s1556_s0 = smov [#allocation5]  }
  0x57   : > { %p1434_p0 = scmp.ne.s32.totalorder %s242_s17, %s1433_s12  ;;  %s1438_s23 = sshll.u32 %s1556_s0, 4  ;;  %s1439_s23 = int_to_ptr.vmem [resolvable:$false] %s1438_s23 }
  0x58   : > { %s1440_s27 = scalar_lea.vmem %s1439_s23, 256  ;;  %p1441_p10 = scmp.lt.s32.totalorder %s242_s17, %s1439_s23 }
  0x59   : > { %p1436_p5 = pnand %p1434_p0, %p1394_p7  ;;  %p1442_p1 = scmp.lt.s32.totalorder %s1440_s27, %s1433_s12 }
  0x5b   : > { %p1437_p2 = pneg %p1436_p5  ;;  %p1443_p4 = por %p1442_p1, %p1441_p10 }
  0x5d   : > { %p1444_p8 = pnand %p1443_p4, %p1437_p2 }
  0x5f   : > { %1447 = shalt.err (!%p1444_p8)
}
  0x60   : > { %1295 = dma.hbm_to_vmem [thread:$0]  (!%p1682_p11), %s1724_s29, 128, %s242_s17, %s231_s2  }
  0x61   : > { %p2031_p6 = scmp.ne.s32.totalorder %s2021_s26, 0 }
  0x62   : > { %s1749_s13 = sand.u32 (!%p2031_p6), 1, %s1542_s19   ;;  %p2032_p7 = scmp.ne.s32.totalorder (!%p2031_p6), %s2019_s24, 0 }
  0x63   : > { %250 = sbr.rel (%p2031_p6) target bundleno = 990 (0x3de), region = 36  ;;  %s1207_s8 = sshll.u32 (!%p2031_p6), %s1749_s13, 6 }
  0x64   : > { %s253_s11 = scalar_lea.sflag (!%p2031_p6), [#allocation3], %s1749_s13  ;;  %s1753_s16 = scalar_lea.vmem (!%p2031_p6), [#allocation2], %s1207_s8 }
  0x68   : > { %1517 = dma.done.wait (%p2032_p7), %s253_s11, 1024  }
  0x69   : > { %1519 = vsyncadd (%p2032_p7), %s253_s11, 4294966272  ;;  %s261_s2 = sand.u32 1, %s1611_s22   ;;  %s1761_s26 = sshll.u32 %s1749_s13, 3 }
  0x6a   : > { %s262_s7 = scalar_lea.sflag [#allocation6], %s261_s2  ;;  %s265_s29 = scalar_lea.vmem [#allocation5], %s1761_s26 }
  0x6b   : > { %1521 = dma.done.wait (%p2032_p7), %s262_s7, 128  }
  0x6c   : > { %1523 = vsyncadd (%p2032_p7), %s262_s7, 4294967168  ;;  %p2033_p8 = scmp.eq.s32.totalorder %s1611_s22, 0 }
  0x6e   : > { %1525 = dma.done.wait (%p2033_p8), [#allocation6], 256   ;;  %p2034_p11 = pmov %p2033_p8 }
  0x6f   : > { %v1343_v0 = vld [vmem:[#allocation7 + $0x8] sm:$0xff]   ;;  %v1344_v1 = vld [vmem:[#allocation7] sm:$0xff]   ;;  %v1773_v2 = vld [vmem:[%s1753_s16] sm:$0xff]   ;;  %vm380_vm0 = vcmask 261120   ;;  %v1557_v10 = vmov 1966171168   ;;  %v508_v12 = vlaneseq }
  0x70   : > { %1527 = vsyncadd (%p2034_p11), [#allocation6], 4294967040  ;;  %1249 = vmatprep.subr.bf16.mxu0 %v1343_v0  ;;  %1269 = vmatprep.subr.bf16.mxu1 %v1343_v0  ;;  %v1776_v3 = vld [vmem:[%s1753_s16 + $0x20] sm:$0xff]   ;;  %v1779_v4 = vld [vmem:[%s1753_s16 + $0x8] sm:$0xff]   ;;  %v506_v11 = vunpack.c.l.s4 %v1557_v10  ;;  %vm724_vm1 = vcmask 130112   ;;  %vm789_vm2 = vcmask 1041409  }
  0x71   : > { %1250 = vmatpush3.bf16.msra.mxu0 %v1343_v0  ;;  %1271 = vmatpush3.bf16.msra.mxu1 %v1343_v0  ;;  %v1782_v5 = vld [vmem:[%s1753_s16 + $0x28] sm:$0xff]   ;;  %v1785_v6 = vld [vmem:[%s1753_s16 + $0x10] sm:$0xff]   ;;  %v1801_v8 = vld [vmem:[%s1753_s16 + $0x18] sm:$0xff]   ;;  %v1813_v14 = vshrl.u32 %v508_v12, 7  ;;  %vm791_vm3 = vcmask 1042434   ;;  %vm793_vm4 = vcmask 1043459  }
  0x72   : > { %1251 = vmatprep.subr.bf16.mxu0 %v1344_v1  ;;  %1270 = vmatprep.subr.bf16.mxu1 %v1344_v1  ;;  %v1788_v7 = vld [vmem:[%s1753_s16 + $0x30] sm:$0xff]   ;;  %v1806_v9 = vld [vmem:[%s1753_s16 + $0x38] sm:$0xff]   ;;  %v507_v13 = vunpack.c.0.s8 %v506_v11  ;;  %v502_v15 = vld [vmem:[%s265_s29] sm:$0xff]  ;;  %vm795_vm5 = vcmask 1044484   ;;  %vm797_vm6 = vcmask 1045509   ;;  %vm799_vm7 = vcmask 1046534  }
  0x73   : > { %1253 = vmatprep.mubr.msk.bf16.mxu0 %vm380_vm0, %v1773_v2  ;;  %1261 = vmatprep.mubr.msk.bf16.mxu1 %vm380_vm0, %v1776_v3  ;;  %v504_v17 = vcombine.high %v502_v15, %v502_v15  ;;  %v1819_v23 = vsub.s32 0, %v1813_v14  ;;  %v1831_v42 = vld [vmem:[%s2010_s3] ss:$0 sm:$0xff]  ;;  %vm801_vm8 = vcmask 1047559   ;;  %vm805_vm10 = vcmask 130048   ;;  %s305_s9 = scalar_lea.vmem [#allocation9], %s1761_s26 }
  0x74   : > { %v510_v16 = vsub.s32 %v507_v13, %v1813_v14  ;;  %s1233_s10 = sshll.u32 %s1611_s22, 7  ;;  %s1062_s12 = sshll.u32 %s305_s9, 4  ;;  %s1063_s12 = int_to_ptr.vmem [resolvable:$true] %s1062_s12 }
  0x75   : > { %1252 = vmatpush3.bf16.msra.mxu0 %v1344_v1  ;;  %1272 = vmatpush3.bf16.msra.mxu1 %v1344_v1  ;;  %s1060_s6 = scalar_lea.hbm %s2012_s5, %s1233_s10  ;;  %s1036_s0 = scalar_lea.sflag [#allocation10], %s1749_s13 }
  0x76   : > { %v511_v18 = vrot.slane %v502_v15, %v510_v16  ;;  %v518_v19 = vrot.slane %v504_v17, %v510_v16  ;;  %s1448_s23 = scalar_lea.vmem %s1063_s12, 128  ;;  %p2035_p9 = scmp.ne.s32.totalorder %s2026_s14, 0 }
  0x77   : > { %p1449_p3 = scmp.ne.s32.totalorder %s1063_s12, %s1448_s23  ;;  %s1558_s27 = smov [#allocation9]  }
  0x78   : > { %1254 = vmatmul.mubr.msk.bf16.vlgmr.msra.gmra.mxu0 %vm380_vm0, %v1779_v4  ;;  %1262 = vmatmul.mubr.msk.bf16.vlgmr.msra.gmra.mxu1 %vm380_vm0, %v1782_v5  ;;  %v519_v20 = vcombine.high %v511_v18, %v511_v18  ;;  %v520_v21 = vcombine.high %v518_v19, %v518_v19  ;;  %v527_v25 = vrot.slane %v511_v18, %v510_v16  ;;  %s1452_s8 = sshll.u32 %s1558_s27, 4  ;;  %s1453_s8 = int_to_ptr.vmem [resolvable:$false] %s1452_s8 }
  0x79   : > { %1257 = vmatprep.mubr.msk.bf16.mxu0 %vm380_vm0, %v1785_v6  ;;  %1265 = vmatprep.mubr.msk.bf16.mxu1 %vm380_vm0, %v1788_v7  ;;  %v534_v26 = vrot.slane %v518_v19, %v510_v16  ;;  %p1450_p12 = pnand %p1449_p3, %p2035_p9  ;;  %s1454_s11 = scalar_lea.vmem %s1453_s8, 256 }
  0x7a   : > { %v541_v22 = vrot.slane %v519_v20, %v510_v16  ;;  %v1821_v24 = vrot.slane %v520_v21, %v510_v16  ;;  %v556_v29 = vrot.slane %v527_v25, %v1819_v23  ;;  %v549_v53 = vcombine.high %v527_v25, %v527_v25  ;;  %p1455_p0 = scmp.lt.s32.totalorder %s1063_s12, %s1453_s8  ;;  %p1456_p5 = scmp.lt.s32.totalorder %s1454_s11, %s1448_s23 }
  0x7b   : > { %v572_v30 = vrot.slane %v534_v26, %v1819_v23  ;;  %v550_v11 = vcombine.high %v534_v26, %v534_v26  ;;  %p1451_p13 = pneg %p1450_p12 }
  0x7c   : > { %v560_v27 = vrot.slane %v541_v22, %v1819_v23  ;;  %v576_v28 = vrot.slane %v1821_v24, %v1819_v23  ;;  %v551_v37 = vcombine.high %v541_v22, %v541_v22  ;;  %v564_v16 = vrot.slane %v549_v53, %v1819_v23  ;;  %p1457_p2 = por %p1456_p5, %p1455_p0 }
  0x7d   : > { %v552_v26 = vcombine.high %v1821_v24, %v1821_v24 }
  0x7e   : > { %v568_v52 = vrot.slane %v551_v37, %v1819_v23  ;;  %p1458_p10 = pnand %p1457_p2, %p1451_p13 }
  0x7f   : > { %v584_v24 = vrot.slane %v552_v26, %v1819_v23 }
  0x80   : > { %1258 = vmatmul.mubr.msk.bf16.gmra.mxu0 %vm380_vm0, %v1801_v8  ;;  %1266 = vmatmul.mubr.msk.bf16.gmra.mxu1 %vm380_vm0, %v1806_v9 }
 0x138   : > { %v1255_v31 = vpop.f32.mrf.mxu0  ;;  %v1263_v32 = vpop.f32.mrf.mxu1 }
 0x139   : > { %v595_v33 = vadd.f32 %v1255_v31, %v560_v27  ;;  %v603_v34 = vadd.f32 %v1263_v32, %v576_v28 }
 0x13a   : > { %v439_v35 = vpop.f32.mrf.mxu0  ;;  %v471_v36 = vpop.f32.mrf.mxu1 }
 0x13b   : > { %v611_v38 = vmax.f32 %v595_v33, 0.0  ;;  %v619_v39 = vmax.f32 %v603_v34, 0.0  ;;  %v593_v40 = vadd.f32 %v556_v29, %v439_v35  ;;  %v601_v41 = vadd.f32 %v572_v30, %v471_v36 }
 0x13c   : > { %v1256_v43 = vpop.f32.mrf.mxu0  ;;  %v1264_v44 = vpop.f32.mrf.mxu1 }
 0x13d   : > { %v609_v45 = vmax.f32 %v593_v40, 0.0  ;;  %v596_v46 = vadd.f32 %v1256_v43, %v560_v27  ;;  %v604_v47 = vadd.f32 %v1264_v44, %v576_v28  ;;  %v642_v50 = vmul.f32 %v1831_v42, %v619_v39 }
 0x13e   : > { %v442_v48 = vpop.f32.mrf.mxu0  ;;  %v474_v49 = vpop.f32.mrf.mxu1  ;;  %v634_v51 = vmul.f32 %v1831_v42, %v611_v38  ;;  %v617_v54 = vmax.f32 %v601_v41, 0.0 }
 0x13f   : > { %v612_v55 = vmax.f32 %v596_v46, 0.0  ;;  %v620_v56 = vmax.f32 %v604_v47, 0.0  ;;  %v602_v57 = vadd.f32 %v572_v30, %v474_v49  ;;  %v594_v58 = vadd.f32 %v556_v29, %v442_v48 }
 0x140   : > { %v678_v59 = vsel %vm380_vm0, %v642_v50, 0.0  ;;  %v654_v60 = vsel %vm380_vm0, %v634_v51, 0.0  ;;  %v1259_v61 = vpop.f32.mrf.mxu0  ;;  %v1267_v62 = vpop.f32.mrf.mxu1  ;;  %v632_v63 = vmul.f32 %v1831_v42, %v609_v45  ;;  %v640_v17 = vmul.f32 %v1831_v42, %v617_v54 }
 0x141   : > { %679 = vadd.xlane.f32.xlu0 %v678_v59  ;;  %655 = vadd.xlane.f32.xlu1 %v654_v60  ;;  %v635_v1 = vmul.f32 %v1831_v42, %v612_v55  ;;  %v618_v13 = vmax.f32 %v602_v57, 0.0  ;;  %v599_v15 = vadd.f32 %v1259_v61, %v568_v52  ;;  %v610_v18 = vmax.f32 %v594_v58, 0.0 }
 0x142   : > { %v455_v0 = vpop.f32.mrf.mxu0  ;;  %v487_v10 = vpop.f32.mrf.mxu1  ;;  %v648_v19 = vsel %vm380_vm0, %v632_v63, 0.0  ;;  %v643_v22 = vmul.f32 %v1831_v42, %v620_v56  ;;  %v580_v29 = vrot.slane %v550_v11, %v1819_v23  ;;  %v672_v32 = vsel %vm380_vm0, %v640_v17, 0.0 }
 0x143   : > { %v657_v20 = vsel %vm380_vm0, %v635_v1, 0.0  ;;  %v615_v30 = vmax.f32 %v599_v15, 0.0  ;;  %v597_v31 = vadd.f32 %v564_v16, %v455_v0  ;;  %v641_v33 = vmul.f32 %v1831_v42, %v618_v13 }
 0x144   : > { %v1260_v21 = vpop.f32.mrf.mxu0  ;;  %v1268_v27 = vpop.f32.mrf.mxu1  ;;  %v681_v36 = vsel %vm380_vm0, %v643_v22, 0.0  ;;  %v633_v37 = vmul.f32 %v1831_v42, %v610_v18  ;;  %v605_v40 = vadd.f32 %v580_v29, %v487_v10  ;;  %v607_v48 = vadd.f32 %v1267_v62, %v584_v24 }
 0x145   : > { %649 = vadd.xlane.f32.xlu0 %v648_v19  ;;  %658 = vadd.xlane.f32.xlu1 %v657_v20  ;;  %v600_v25 = vadd.f32 %v1260_v21, %v568_v52  ;;  %v613_v39 = vmax.f32 %v597_v31, 0.0  ;;  %v675_v41 = vsel %vm380_vm0, %v641_v33, 0.0  ;;  %v638_v43 = vmul.f32 %v1831_v42, %v615_v30 }
 0x146   : > { %v458_v28 = vpop.f32.mrf.mxu0  ;;  %v490_v38 = vpop.f32.mrf.mxu1  ;;  %v651_v46 = vsel %vm380_vm0, %v633_v37, 0.0  ;;  %v621_v49 = vmax.f32 %v605_v40, 0.0  ;;  %v608_v50 = vadd.f32 %v1268_v27, %v584_v24  ;;  %v623_v56 = vmax.f32 %v607_v48, 0.0 }
 0x147   : > { %v616_v34 = vmax.f32 %v600_v25, 0.0  ;;  %v598_v35 = vadd.f32 %v564_v16, %v458_v28  ;;  %v606_v45 = vadd.f32 %v580_v29, %v490_v38  ;;  %v666_v51 = vsel %vm380_vm0, %v638_v43, 0.0 }
 0x148   : > { %v636_v54 = vmul.f32 %v1831_v42, %v613_v39  ;;  %v624_v57 = vmax.f32 %v608_v50, 0.0  ;;  %v644_v60 = vmul.f32 %v1831_v42, %v621_v49  ;;  %v646_v0 = vmul.f32 %v1831_v42, %v623_v56 }
 0x149   : > { %673 = vadd.xlane.f32.xlu0 %v672_v32  ;;  %682 = vadd.xlane.f32.xlu1 %v681_v36  ;;  %v614_v44 = vmax.f32 %v598_v35, 0.0  ;;  %v639_v47 = vmul.f32 %v1831_v42, %v616_v34  ;;  %v622_v52 = vmax.f32 %v606_v45, 0.0  ;;  %v697_v18 = vand.u32 127, %v508_v12 }
 0x14a   : > { %v660_v58 = vsel %vm380_vm0, %v636_v54, 0.0  ;;  %v684_v62 = vsel %vm380_vm0, %v644_v60, 0.0  ;;  %v647_v1 = vmul.f32 %v1831_v42, %v624_v57  ;;  %v690_v10 = vsel %vm380_vm0, %v646_v0, 0.0 }
 0x14b   : > { %v669_v53 = vsel %vm380_vm0, %v639_v47, 0.0  ;;  %v637_v55 = vmul.f32 %v1831_v42, %v614_v44  ;;  %v645_v61 = vmul.f32 %v1831_v42, %v622_v52  ;;  %v719_v21 = vadd.s32 4294967288, %v697_v18 }
 0x14c   : > { %v693_v11 = vsel %vm380_vm0, %v647_v1, 0.0  ;;  %v717_v27 = vsub.s32 %v697_v18, %v1813_v14  ;;  %vm698_vm9 = vcmp.lt.s32.totalorder %v697_v18, 12 }
 0x14d   : > { %676 = vadd.xlane.f32.xlu1 %v675_v41  ;;  %652 = vadd.xlane.f32.xlu0 %v651_v46  ;;  %v663_v59 = vsel %vm380_vm0, %v637_v55, 0.0  ;;  %v687_v63 = vsel %vm380_vm0, %v645_v61, 0.0  ;;  %v722_v42 = vsub.s32 %v719_v21, %v1813_v14 }
 0x151   : > { %667 = vadd.xlane.f32.xlu0 %v666_v51  ;;  %670 = vadd.xlane.f32.xlu1 %v669_v53 }
 0x155   : > { %661 = vadd.xlane.f32.xlu0 %v660_v58  ;;  %664 = vadd.xlane.f32.xlu1 %v663_v59 }
 0x159   : > { %685 = vadd.xlane.f32.xlu0 %v684_v62  ;;  %688 = vadd.xlane.f32.xlu1 %v687_v63 }
 0x15d   : > { %691 = vadd.xlane.f32.xlu0 %v690_v10  ;;  %694 = vadd.xlane.f32.xlu1 %v693_v11 }
 0x1ca   : > { %v680_v13 = vpop.xlane.xlu0 %679  ;;  %v656_v15 = vpop.xlane.xlu1 %655 }
 0x1cb   : > { %v729_v32 = vrot.slane %v656_v15, %v717_v27  ;;  %v765_v45 = vrot.slane %v680_v13, %v717_v27 }
 0x1ce   : > { %v650_v16 = vpop.xlane.xlu0 %649  ;;  %v659_v17 = vpop.xlane.xlu1 %658 }
 0x1cf   : > { %v718_v30 = vrot.slane %v650_v16, %v717_v27  ;;  %v733_v31 = vrot.slane %v659_v17, %v722_v42 }
 0x1d1   : > { %v734_v39 = vsel %vm724_vm1, %v733_v31, %v729_v32  ;;  %v867_v32 = vsub.s32 4, %v1813_v14 }
 0x1d2   : > { %v674_v19 = vpop.xlane.xlu0 %673  ;;  %v683_v20 = vpop.xlane.xlu1 %682 }
 0x1d3   : > { %v756_v40 = vrot.slane %v674_v19, %v717_v27  ;;  %v769_v41 = vrot.slane %v683_v20, %v722_v42 }
 0x1d5   : > { %v770_v55 = vsel %vm724_vm1, %v769_v41, %v765_v45 }
 0x1d6   : > { %v677_v22 = vpop.xlane.xlu1 %676  ;;  %v653_v25 = vpop.xlane.xlu0 %652 }
 0x1d7   : > { %v723_v26 = vrot.slane %v653_v25, %v722_v42  ;;  %v760_v37 = vrot.slane %v677_v22, %v722_v42 }
 0x1d9   : > { %v725_v33 = vsel %vm724_vm1, %v723_v26, %v718_v30  ;;  %v761_v50 = vsel %vm724_vm1, %v760_v37, %v756_v40  ;;  %v845_v26 = vsub.s32 2, %v1813_v14  ;;  %v856_v30 = vsub.s32 3, %v1813_v14 }
 0x1da   : > { %v668_v28 = vpop.xlane.xlu0 %667  ;;  %v671_v29 = vpop.xlane.xlu1 %670  ;;  %v790_v43 = vsel %vm789_vm2, %v734_v39, %v725_v33  ;;  %v878_v33 = vsub.s32 5, %v1813_v14 }
 0x1db   : > { %v747_v12 = vrot.slane %v668_v28, %v717_v27  ;;  %v751_v34 = vrot.slane %v671_v29, %v722_v42 }
 0x1dd   : > { %v752_v46 = vsel %vm724_vm1, %v751_v34, %v747_v12  ;;  %v889_v34 = vsub.s32 6, %v1813_v14 }
 0x1de   : > { %v662_v35 = vpop.xlane.xlu0 %661  ;;  %v665_v36 = vpop.xlane.xlu1 %664 }
 0x1df   : > { %v738_v38 = vrot.slane %v662_v35, %v717_v27  ;;  %v742_v24 = vrot.slane %v665_v36, %v722_v42  ;;  %v900_v36 = vsub.s32 7, %v1813_v14 }
 0x1e1   : > { %v743_v44 = vsel %vm724_vm1, %v742_v24, %v738_v38 }
 0x1e2   : > { %v792_v47 = vsel %vm791_vm3, %v743_v44, %v790_v43  ;;  %v686_v48 = vpop.xlane.xlu0 %685  ;;  %v689_v49 = vpop.xlane.xlu1 %688 }
 0x1e3   : > { %v794_v51 = vsel %vm793_vm4, %v752_v46, %v792_v47  ;;  %v774_v52 = vrot.slane %v686_v48, %v717_v27  ;;  %v778_v53 = vrot.slane %v689_v49, %v722_v42 }
 0x1e4   : > { %v796_v54 = vsel %vm795_vm5, %v761_v50, %v794_v51 }
 0x1e5   : > { %v779_v56 = vsel %vm724_vm1, %v778_v53, %v774_v52  ;;  %v798_v59 = vsel %vm797_vm6, %v770_v55, %v796_v54 }
 0x1e6   : > { %v692_v57 = vpop.xlane.xlu0 %691  ;;  %v695_v58 = vpop.xlane.xlu1 %694  ;;  %v800_v63 = vsel %vm799_vm7, %v779_v56, %v798_v59 }
 0x1e7   : > { %v783_v60 = vrot.slane %v692_v57, %v717_v27  ;;  %v787_v61 = vrot.slane %v695_v58, %v722_v42  ;;  %v834_v27 = vsub.s32 1, %v1813_v14 }
 0x1e9   : > { %v788_v62 = vsel %vm724_vm1, %v787_v61, %v783_v60 }
 0x1ea   : > { %v802_v0 = vsel %vm801_vm8, %v788_v62, %v800_v63 }
 0x1eb   : > { %v804_v1 = vsel %vm698_vm9, %v802_v0, -1e+30 }
 0x1ec   : > { %v806_v10 = vsel %vm805_vm10, %v804_v1, -inf }
 0x1ed   : > { %807 = vmax.xlane.f32.xlu0 %v806_v10 }
 0x276   : > { %v808_v11 = vpop.xlane.xlu0 %807 }
 0x277   : > { %v809_v13 = vsub.f32 %v804_v1, %v808_v11 }
 0x279   : > { %v810_v15 = vmul.f32 1.442695, %v809_v13 }
 0x27b   : > { %1362 = vpow2.f32 %v810_v15 }
 0x288   : > { %v1363_v16 = vpop.eup %1362 }
 0x289   : > { %v812_v17 = vsel %vm805_vm10, %v1363_v16, 0.0 }
 0x28a   : > { %813 = vadd.xlane.f32.xlu1 %v812_v17 }
 0x313   : > { %v814_v18 = vpop.xlane.xlu1 %813 }
 0x314   : > { %1364 = vrcp.f32 %v814_v18 }
 0x321   : > { %v1365_v19 = vpop.eup %1364 }
 0x322   : > { %v816_v20 = vmul.f32 %v1365_v19, %v814_v18 }
 0x324   : > { %v817_v21 = vsub.f32 2.0, %v816_v20 }
 0x326   : > { %v818_v22 = vmul.f32 %v1365_v19, %v817_v21 }
 0x328   : > { %v819_v25 = vmul.f32 %v1363_v16, %v818_v22 }
 0x32a   : > { %v824_v42 = vrot.slane %v819_v25, %v1819_v23  ;;  %820 = vst.msk [vmem:[%s305_s9] sm:$0xff] %vm805_vm10, %v819_v25  ;;  %v835_v28 = vrot.slane %v819_v25, %v834_v27  ;;  %v846_v29 = vrot.slane %v819_v25, %v845_v26  ;;  %v857_v31 = vrot.slane %v819_v25, %v856_v30 }
 0x32b   : > { %v868_v23 = vrot.slane %v819_v25, %v867_v32  ;;  %v879_v12 = vrot.slane %v819_v25, %v878_v33  ;;  %v890_v35 = vrot.slane %v819_v25, %v889_v34  ;;  %v901_v37 = vrot.slane %v819_v25, %v900_v36 }
 0x32c   : > { %830 = vbcast.lane.b32.xlu1 %v824_v42, 264  ;;  %826 = vbcast.lane.b32.xlu0 %v824_v42, 256 }
 0x330   : > { %837 = vbcast.lane.b32.xlu1 %v835_v28, 256  ;;  %848 = vbcast.lane.b32.xlu0 %v846_v29, 256 }
 0x334   : > { %841 = vbcast.lane.b32.xlu1 %v835_v28, 264  ;;  %859 = vbcast.lane.b32.xlu0 %v857_v31, 256 }
 0x338   : > { %852 = vbcast.lane.b32.xlu1 %v846_v29, 264  ;;  %870 = vbcast.lane.b32.xlu0 %v868_v23, 256 }
 0x33c   : > { %863 = vbcast.lane.b32.xlu1 %v857_v31, 264  ;;  %881 = vbcast.lane.b32.xlu0 %v879_v12, 256 }
 0x340   : > { %874 = vbcast.lane.b32.xlu1 %v868_v23, 264  ;;  %892 = vbcast.lane.b32.xlu0 %v890_v35, 256 }
 0x344   : > { %885 = vbcast.lane.b32.xlu1 %v879_v12, 264  ;;  %903 = vbcast.lane.b32.xlu0 %v901_v37, 256 }
 0x348   : > { %896 = vbcast.lane.b32.xlu1 %v890_v35, 264 }
 0x34c   : > { %907 = vbcast.lane.b32.xlu1 %v901_v37, 264 }
 0x34d   : > { %1461 = shalt.err (!%p1458_p10)
}
 0x34e   : > { %s1462_s16 = scalar_lea.hbm %s1060_s6, 128  ;;  %s1466_s29 = scalar_lea.hbm %s2012_s5, 256 }
 0x34f   : > { %p1463_p1 = scmp.ne.s32.totalorder %s1060_s6, %s1462_s16  ;;  %p1467_p7 = scmp.lt.s32.totalorder %s1060_s6, %s2012_s5 }
 0x350   : > { %p1468_p8 = scmp.lt.s32.totalorder %s1466_s29, %s1462_s16 }
 0x351   : > { %p1464_p4 = pnand %p1463_p1, %p2035_p9 }
 0x352   : > { %p1469_p11 = por %p1468_p8, %p1467_p7 }
 0x353   : > { %p1465_p6 = pneg %p1464_p4 }
 0x355   : > { %p1470_p3 = pnand %p1469_p11, %p1465_p6 }
 0x357   : > { %1473 = shalt.err (!%p1470_p3)
}
 0x358   : > { %1282 = dma.vmem_to_hbm [thread:$0]  (%p2035_p9), %s1063_s12, 128, %s1060_s6, %s1036_s0   ;;  %v912_v40 = vunpack.c.h.bf16 %v1779_v4  ;;  %v910_v41 = vunpack.c.h.bf16 %v1773_v2  ;;  %v909_v43 = vunpack.c.l.bf16 %v1773_v2  ;;  %v911_v44 = vunpack.c.l.bf16 %v1779_v4 }
 0x359   : > { %v913_v45 = vunpack.c.l.bf16 %v1785_v6  ;;  %v914_v49 = vunpack.c.h.bf16 %v1785_v6  ;;  %v915_v53 = vunpack.c.l.bf16 %v1801_v8  ;;  %v916_v4 = vunpack.c.h.bf16 %v1801_v8  ;;  %s298_s9 = scalar_lea.vmem [#allocation8], %s1761_s26  ;;  %s1968_s12 = scalar_lea.hbm %s2011_s4, %s1233_s10 }
 0x35a   : > { %v917_v59 = vunpack.c.l.bf16 %v1776_v3  ;;  %v918_v8 = vunpack.c.h.bf16 %v1776_v3  ;;  %v919_v19 = vunpack.c.l.bf16 %v1782_v5  ;;  %v920_v27 = vunpack.c.h.bf16 %v1782_v5  ;;  %s1049_s15 = sshll.u32 %s298_s9, 4  ;;  %s1031_s26 = scalar_lea.sflag [#allocation4], %s1749_s13  ;;  %s1050_s15 = int_to_ptr.vmem [resolvable:$true] %s1049_s15 }
 0x35b   : > { %v921_v32 = vunpack.c.l.bf16 %v1788_v7  ;;  %v922_v36 = vunpack.c.h.bf16 %v1788_v7  ;;  %s1474_s0 = scalar_lea.vmem %s1050_s15, 128  ;;  %s1559_s23 = smov [#allocation8]  }
 0x35c   : > { %p1475_p12 = scmp.ne.s32.totalorder %s1050_s15, %s1474_s0  ;;  %s1478_s27 = sshll.u32 %s1559_s23, 4  ;;  %s1479_s27 = int_to_ptr.vmem [resolvable:$false] %s1478_s27 }
 0x35d   : > { %s1480_s22 = scalar_lea.vmem %s1479_s27, 256  ;;  %p1481_p5 = scmp.lt.s32.totalorder %s1050_s15, %s1479_s27 }
 0x35e   : > { %p1476_p13 = pnand %p1475_p12, %p2035_p9  ;;  %p1482_p2 = scmp.lt.s32.totalorder %s1480_s22, %s1474_s0 }
 0x360   : > { %p1477_p0 = pneg %p1476_p13  ;;  %p1483_p10 = por %p1482_p2, %p1481_p5 }
 0x362   : > { %p1484_p1 = pnand %p1483_p10, %p1477_p0 }
 0x39e   : > { %v831_v14 = vpop.permute.xlu1 %830  ;;  %v827_v38 = vpop.permute.xlu0 %826 }
 0x39f   : > { %v926_v50 = vmul.f32 %v910_v41, %v831_v14  ;;  %v925_v51 = vmul.f32 %v909_v43, %v827_v38 }
 0x3a1   : > { %v942_v58 = vsel %vm380_vm0, %v926_v50, 0.0  ;;  %v941_v60 = vsel %vm380_vm0, %v925_v51, 0.0 }
 0x3a2   : > { %v838_v24 = vpop.permute.xlu1 %837  ;;  %v849_v39 = vpop.permute.xlu0 %848  ;;  %v943_v15 = vadd.f32 %v942_v58, %v941_v60 }
 0x3a3   : > { %v927_v52 = vmul.f32 %v911_v44, %v838_v24  ;;  %v929_v54 = vmul.f32 %v913_v45, %v849_v39 }
 0x3a4   : > { %v944_v26 = vrot.slane %v943_v15, 4 }
 0x3a5   : > { %v950_v6 = vsel %vm380_vm0, %v927_v52, 0.0  ;;  %v959_v63 = vsel %vm380_vm0, %v929_v54, 0.0 }
 0x3a6   : > { %v842_v46 = vpop.permute.xlu1 %841  ;;  %v860_v47 = vpop.permute.xlu0 %859  ;;  %v945_v37 = vadd.f32 %v944_v26, %v943_v15 }
 0x3a7   : > { %v928_v48 = vmul.f32 %v912_v40, %v842_v46  ;;  %v931_v61 = vmul.f32 %v915_v53, %v860_v47  ;;  %v923_v40 = vunpack.c.l.bf16 %v1806_v9 }
 0x3a8   : > { %v946_v7 = vrot.slane %v945_v37, 2 }
 0x3a9   : > { %v951_v57 = vsel %vm380_vm0, %v928_v48, 0.0  ;;  %v968_v16 = vsel %vm380_vm0, %v931_v61, 0.0 }
 0x3aa   : > { %v853_v55 = vpop.permute.xlu1 %852  ;;  %v871_v56 = vpop.permute.xlu0 %870  ;;  %v952_v0 = vadd.f32 %v951_v57, %v950_v6  ;;  %v947_v60 = vadd.f32 %v946_v7, %v945_v37 }
 0x3ab   : > { %v930_v2 = vmul.f32 %v914_v49, %v853_v55  ;;  %v933_v17 = vmul.f32 %v917_v59, %v871_v56  ;;  %v924_v49 = vunpack.c.h.bf16 %v1806_v9 }
 0x3ac   : > { %v953_v20 = vrot.slane %v952_v0, 4  ;;  %v948_v15 = vrot.slane %v947_v60, 1 }
 0x3ad   : > { %v960_v62 = vsel %vm380_vm0, %v930_v2, 0.0  ;;  %v977_v3 = vsel %vm380_vm0, %v933_v17, 0.0 }
 0x3ae   : > { %v864_v1 = vpop.permute.xlu1 %863  ;;  %v882_v10 = vpop.permute.xlu0 %881  ;;  %v961_v11 = vadd.f32 %v960_v62, %v959_v63  ;;  %v954_v23 = vadd.f32 %v953_v20, %v952_v0 }
 0x3af   : > { %v932_v13 = vmul.f32 %v916_v4, %v864_v1  ;;  %v935_v30 = vmul.f32 %v919_v19, %v882_v10 }
 0x3b0   : > { %v962_v25 = vrot.slane %v961_v11, 4  ;;  %v955_v41 = vrot.slane %v954_v23, 2 }
 0x3b1   : > { %v969_v18 = vsel %vm380_vm0, %v932_v13, 0.0  ;;  %v986_v38 = vsel %vm380_vm0, %v935_v30, 0.0 }
 0x3b2   : > { %v970_v21 = vadd.f32 %v969_v18, %v968_v16  ;;  %v875_v22 = vpop.permute.xlu1 %874  ;;  %v893_v29 = vpop.permute.xlu0 %892  ;;  %v963_v34 = vadd.f32 %v962_v25, %v961_v11  ;;  %v956_v56 = vadd.f32 %v955_v41, %v954_v23 }
 0x3b3   : > { %v934_v42 = vmul.f32 %v918_v8, %v875_v22  ;;  %v937_v24 = vmul.f32 %v921_v32, %v893_v29 }
 0x3b4   : > { %v971_v28 = vrot.slane %v970_v21, 4  ;;  %v964_v47 = vrot.slane %v963_v34, 2  ;;  %v957_v1 = vrot.slane %v956_v56, 1 }
 0x3b5   : > { %v978_v31 = vsel %vm380_vm0, %v934_v42, 0.0  ;;  %v995_v53 = vsel %vm380_vm0, %v937_v24, 0.0 }
 0x3b6   : > { %v979_v33 = vadd.f32 %v978_v31, %v977_v3  ;;  %v886_v12 = vpop.permute.xlu1 %885  ;;  %v972_v14 = vadd.f32 %v971_v28, %v970_v21  ;;  %v904_v45 = vpop.permute.xlu0 %903  ;;  %v965_v58 = vadd.f32 %v964_v47, %v963_v34  ;;  %v958_v20 = vadd.f32 %v957_v1, %v956_v56 }
 0x3b7   : > { %v936_v35 = vmul.f32 %v920_v27, %v886_v12  ;;  %v939_v54 = vmul.f32 %v923_v40, %v904_v45  ;;  %v949_v27 = vadd.f32 %v948_v15, %v947_v60 }
 0x3b8   : > { %v980_v5 = vrot.slane %v979_v33, 4  ;;  %v973_v50 = vrot.slane %v972_v14, 2  ;;  %v966_v8 = vrot.slane %v965_v58, 1 }
 0x3b9   : > { %v987_v39 = vsel %vm380_vm0, %v936_v35, 0.0  ;;  %v1004_v63 = vsel %vm380_vm0, %v939_v54, 0.0  ;;  %v1021_v30 = vsel %vm789_vm2, %v958_v20, %v949_v27 }
 0x3ba   : > { %v981_v43 = vadd.f32 %v980_v5, %v979_v33  ;;  %v988_v44 = vadd.f32 %v987_v39, %v986_v38  ;;  %v897_v46 = vpop.permute.xlu1 %896  ;;  %v974_v6 = vadd.f32 %v973_v50, %v972_v14  ;;  %v967_v42 = vadd.f32 %v966_v8, %v965_v58 }
 0x3bb   : > { %v938_v48 = vmul.f32 %v922_v36, %v897_v46 }
 0x3bc   : > { %v989_v51 = vrot.slane %v988_v44, 4  ;;  %v982_v52 = vrot.slane %v981_v43, 2  ;;  %v975_v16 = vrot.slane %v974_v6, 1  ;;  %v1022_v23 = vsel %vm791_vm3, %v967_v42, %v1021_v30 }
 0x3bd   : > { %v996_v55 = vsel %vm380_vm0, %v938_v48, 0.0 }
 0x3be   : > { %v990_v57 = vadd.f32 %v989_v51, %v988_v44  ;;  %v997_v2 = vadd.f32 %v996_v55, %v995_v53  ;;  %v908_v4 = vpop.permute.xlu1 %907  ;;  %v983_v9 = vadd.f32 %v982_v52, %v981_v43  ;;  %v976_v26 = vadd.f32 %v975_v16, %v974_v6 }
 0x3bf   : > { %v940_v59 = vmul.f32 %v924_v49, %v908_v4 }
 0x3c0   : > { %v991_v61 = vrot.slane %v990_v57, 2  ;;  %v998_v62 = vrot.slane %v997_v2, 4  ;;  %v984_v19 = vrot.slane %v983_v9, 1  ;;  %v1023_v12 = vsel %vm793_vm4, %v976_v26, %v1022_v23 }
 0x3c1   : > { %v1005_v0 = vsel %vm380_vm0, %v940_v59, 0.0 }
 0x3c2   : > { %v992_v10 = vadd.f32 %v991_v61, %v990_v57  ;;  %v999_v11 = vadd.f32 %v998_v62, %v997_v2  ;;  %v1006_v13 = vadd.f32 %v1005_v0, %v1004_v63  ;;  %v985_v3 = vadd.f32 %v984_v19, %v983_v9 }
 0x3c4   : > { %v1000_v17 = vrot.slane %v999_v11, 2  ;;  %v1007_v18 = vrot.slane %v1006_v13, 4  ;;  %v993_v21 = vrot.slane %v992_v10, 1  ;;  %v1024_v35 = vsel %vm795_vm5, %v985_v3, %v1023_v12 }
 0x3c6   : > { %v1001_v22 = vadd.f32 %v1000_v17, %v999_v11  ;;  %v1008_v25 = vadd.f32 %v1007_v18, %v1006_v13  ;;  %v994_v31 = vadd.f32 %v993_v21, %v992_v10 }
 0x3c8   : > { %v1002_v28 = vrot.slane %v1001_v22, 1  ;;  %v1009_v29 = vrot.slane %v1008_v25, 2  ;;  %v1025_v36 = vsel %vm797_vm6, %v994_v31, %v1024_v35 }
 0x3ca   : > { %v1010_v32 = vadd.f32 %v1009_v29, %v1008_v25  ;;  %v1003_v33 = vadd.f32 %v1002_v28, %v1001_v22 }
 0x3cc   : > { %v1011_v34 = vrot.slane %v1010_v32, 1  ;;  %v1026_v14 = vsel %vm799_vm7, %v1003_v33, %v1025_v36 }
 0x3ce   : > { %v1012_v37 = vadd.f32 %v1011_v34, %v1010_v32 }
 0x3d0   : > { %v1027_v5 = vsel %vm801_vm8, %v1012_v37, %v1026_v14 }
 0x3d1   : > { %1029 = vst.msk [vmem:[%s298_s9] sm:$0xff] %vm380_vm0, %v1027_v5 }
 0x3d2   : > { %1487 = shalt.err (!%p1484_p1)
}
 0x3d3   : > { %s1488_s10 = scalar_lea.hbm %s1968_s12, 128  ;;  %s1492_s11 = scalar_lea.hbm %s2011_s4, 256 }
 0x3d4   : > { %p1489_p4 = scmp.ne.s32.totalorder %s1968_s12, %s1488_s10  ;;  %p1493_p8 = scmp.lt.s32.totalorder %s1968_s12, %s2011_s4 }
 0x3d5   : > { %p1494_p11 = scmp.lt.s32.totalorder %s1492_s11, %s1488_s10 }
 0x3d6   : > { %p1490_p6 = pnand %p1489_p4, %p2035_p9 }
 0x3d7   : > { %p1495_p3 = por %p1494_p11, %p1493_p8 }
 0x3d8   : > { %p1491_p7 = pneg %p1490_p6 }
 0x3da   : > { %p1496_p12 = pnand %p1495_p3, %p1491_p7 }
 0x3dc   : > { %1499 = shalt.err (!%p1496_p12)
}
 0x3dd   : > { %1281 = dma.vmem_to_hbm [thread:$0]  (%p2035_p9), %s1050_s15, 128, %s1968_s12, %s1031_s26  }
 0x3de PF: > { %s1074_s7 = sand.u32 1, %s1538_s18   ;;  %p2036_p13 = scmp.ne.s32.totalorder %s2020_s25, 0 }
 0x3df   : > { %p2037_p0 = scmp.ge.s32.totalorder %s1550_s21, 2  ;;  %s1075_s29 = scalar_lea.sflag [#allocation4], %s1074_s7 }
 0x3e1   : > { %p1297_p5 = pnand %p2037_p0, %p2036_p13 }
 0x3e3   : > { %p1298_p2 = pneg %p1297_p5 }
 0x3e5   : > { %1529 = dma.done.wait (%p1298_p2), %s1075_s29, 128  }
 0x3e6   : > { %1531 = vsyncadd (%p1298_p2), %s1075_s29, 4294967168  ;;  %s1084_s24 = scalar_lea.sflag [#allocation10], %s1074_s7 }
 0x3e7   : > { %1533 = dma.done.wait (%p1298_p2), %s1084_s24, 128  }
 0x3e8   : > { %1535 = vsyncadd (%p1298_p2), %s1084_s24, 4294967168  ;;  %s2038_s14 = sld [smem:[#allocation16_spill]]  ;;  %p25_p9 = scmp.ge.s32.totalorder %s1644_s30, 4  }
 0x3e9   : > { %s2039_s18 = smov %s1542_s19  ;;  %s2040_s19 = smov %s1546_s20 }
 0x3ea   : > { %s2042_s21 = smov %s1644_s30  ;;  %27 = sbr.rel (!%p25_p9) target bundleno = 12 (0xc), region = 115 }
 0x3ee   : > { %s2041_s20 = smov %s2038_s14 }
 0x3ef   :  { %1089 = vsyncpa [#allocation3], 1 }
 0x3f0   :  { %1091 = vsyncpa [#allocation3 + $0x1], 1 }
 0x3f1   :  { %1092 = vsyncpa [#allocation6], 1 }
 0x3f2   :  { %1094 = vsyncpa [#allocation6 + $0x1], 1 }
 0x3f3   :  { %1095 = vsyncpa [#allocation4], 1 }
 0x3f4   :  { %1097 = vsyncpa [#allocation4 + $0x1], 1 }
 0x3f5   :  { %1098 = vsyncpa [#allocation10], 1 }
 0x3f6   :  { %1100 = vsyncpa [#allocation10 + $0x1], 1 }

// kernel: tpu_custom_call.1
= control target key start
LH: loop header
LB: loop body
LE: loop exit
PB: predicated region body
PF: predicated region fallthrough
CT: control target
= control target key end

     0   :  { %s2007_s0 = inlined_call_operand.hbm [shape: bf16[16,16,32], index: 0, kind: input, shape index: {}]   ;;  %s2008_s1 = inlined_call_operand.hbm [shape: f32[16,32], index: 1, kind: input, shape index: {}]   ;;  %s2009_s2 = inlined_call_operand.hbm [shape: bf16[32,32], index: 2, kind: input, shape index: {}]   ;;  %s2010_s3 = inlined_call_operand.vmem [shape: f32[1,32], index: 3, kind: input, shape index: {}]   ;;  %s2011_s4 = inlined_call_operand.hbm [shape: f32[16,32], index: 4, kind: output, shape index: {0}]   ;;  %s2012_s5 = inlined_call_operand.hbm [shape: f32[16,16], index: 5, kind: output, shape index: {1}]  }
   0x1   :  { %2017 = sst [smem:[#allocation17_spill]] %s2007_s0 }
   0x2   :  { %2018 = sst [smem:[#allocation18_spill]] %s2009_s2 }
   0x3   :  { %11 = vsyncpa [#allocation3], 0 }
   0x4   :  { %13 = vsyncpa [#allocation3 + $0x1], 0 }
   0x5   :  { %14 = vsyncpa [#allocation6], 0 }
   0x6   :  { %16 = vsyncpa [#allocation6 + $0x1], 0 }
   0x7   :  { %17 = vsyncpa [#allocation4], 0 }
   0x8   :  { %19 = vsyncpa [#allocation4 + $0x1], 0 }
   0x9   :  { %20 = vsyncpa [#allocation10], 0 }
   0xa   :  { %22 = vsyncpa [#allocation10 + $0x1], 0  ;;  %s1590_s18 = smov 0   ;;  %s1592_s19 = smov 0  }
   0xb   :  { %s1594_s20 = smov 0   ;;  %s1596_s21 = smov 0  }
   0xc LB: > { %s1611_s22 = sadd.s32 4294967295, %s1550_s21   ;;  %s1196_s23 = sadd.s32 4294967294, %s1550_s21   ;;  %s1550_s21 = sphi %s1596_s21, %s2042_s21   ;;  %s1546_s20 = sphi %s1594_s20, %s2041_s20   ;;  %s1542_s19 = sphi %s1592_s19, %s2040_s19   ;;  %s1538_s18 = sphi %s1590_s18, %s2039_s18  }
   0xd   : > { %p48_p0 = scmp.ne.s32.totalorder %s1542_s19, %s1538_s18  ;;  %p2013_p1 = scmp.eq.s32.totalorder %s1611_s22, 0 }
   0xe   : > { %p146_p3 = scmp.eq.s32.totalorder %s1196_s23, 1  ;;  %p1197_p5 = scmp.ge.s32.totalorder %s1550_s21, 1 }
   0xf   : > { %p1620_p4 = por %p2013_p1, %p48_p0  ;;  %p179_p7 = scmp.lt.s32.totalorder %s1550_s21, 3 }
  0x10   : > { %p1625_p6 = por %p146_p3, %p48_p0  ;;  %s1552_s27 = smov [#allocation7]  }
  0x11   : > { %s2019_s24 = scalar_select %p1620_p4, 1, 0 }
  0x12   : > { %s2020_s25 = scalar_select %p1625_p6, 1, 0 }
  0x13   : > { %p1630_p8 = pnand %p1197_p5, %p179_p7  ;;  %s191_s28 = sshll.u32 %s1552_s27, 4  ;;  %s192_s28 = int_to_ptr.vmem [resolvable:$true] %s191_s28 }
  0x14   : > { %s1644_s30 = sadd.s32 1, %s1550_s21   ;;  %s35_s6 = sadd.s32 1, %s1546_s20 }
  0x15   : > { %s2021_s26 = scalar_select %p1630_p8, 1, 0 }
  0x16   : > { %p1285_p9 = pneg %p1630_p8  ;;  %s32_s7 = ssub.s32 %s1550_s21, %s1644_s30 }
  0x17   : > { %s1377_s8 = scalar_lea.vmem %s192_s28, 256  ;;  %p1385_p5 = scmp.lt.s32.totalorder %s192_s28, %s192_s28 }
  0x18   : > { %p1639_p11 = pnand %p1285_p9, %p2013_p1  ;;  %p1378_p13 = scmp.ne.s32.totalorder %s192_s28, %s1377_s8 }
  0x19   : > { %p1386_p7 = scmp.lt.s32.totalorder %s1377_s8, %s1377_s8 }
  0x1a   : > { %p1368_p12 = pneg %p1639_p11 }
  0x1b   : > { %p1387_p10 = por %p1386_p7, %p1385_p5 }
  0x1c   : > { %p1380_p0 = pnand %p1378_p13, %p1368_p12 }
  0x1e   : > { %p1381_p3 = pneg %p1380_p0 }
  0x20   : > { %p1388_p2 = pnand %p1387_p10, %p1381_p3 }
  0x22   : > { %1391 = shalt.err (!%p1388_p2)
}
  0x23   : > { %s1553_s9 = smov 64   ;;  %s1554_s10 = smov 4  }
  0x24   : > { %s2023_s2 = sld [smem:[#allocation18_spill]]  ;;  %p33_p2 = scmp.eq.s32.totalorder %s32_s7, 0 }
  0x25   : > { %p42_p9 = scmp.ne.s32.totalorder %s1546_s20, %s1542_s19  ;;  %p43_p10 = scmp.eq.s32.totalorder %s1550_s21, 0 }
  0x26   : > { %p1304_p12 = scmp.lt.s32.totalorder %s1550_s21, 2  ;;  %p2025_p0 = scmp.eq.s32.totalorder %s1611_s22, 1 }
  0x27   : > { %s1664_s13 = scalar_select %p33_p2, %s1546_s20, %s35_s6  }
  0x28   : > { %p44_p13 = por %p43_p10, %p42_p9  ;;  %p1668_p3 = por %p2025_p0, %p42_p9 }
  0x29   : > { %2024 = sst [smem:[#allocation16_spill]] %s1664_s13  ;;  %s1673_s15 = sand.u32 1, %s1546_s20  }
  0x2a   : > { %1288 = dma.hbm_to_vmem [thread:$0]  (!%p1639_p11), %s2023_s2, 256, %s192_s28, [#allocation6], %s1553_s9, %s1553_s9, %s1554_s10  }
  0x2b   : > { %s2026_s14 = scalar_select %p1668_p3, 1, 0 }
  0x2c   : > { %s1238_s16 = sshll.u32 %s1550_s21, 10  ;;  %s1200_s17 = sshll.u32 %s1673_s15, 6 }
  0x2d   : > { %s2027_s0 = sld [smem:[#allocation17_spill]]  ;;  %s212_s29 = scalar_lea.vmem [#allocation2], %s1200_s17 }
  0x2e   : > { %s220_s6 = sshll.u32 %s212_s29, 4  ;;  %p1682_p11 = pnand %p1304_p12, %p44_p13  ;;  %s1686_s6 = int_to_ptr.vmem [resolvable:$true] %s220_s6 }
  0x30   : > { %p1394_p7 = pneg %p1682_p11 }
  0x33   : > { %s1680_s28 = scalar_lea.hbm %s2027_s0, %s1238_s16  ;;  %s1397_s23 = scalar_lea.hbm %s2027_s0, 2048 }
  0x34   : > { %s1392_s12 = scalar_lea.hbm %s1680_s28, 1024  ;;  %p1398_p10 = scmp.lt.s32.totalorder %s1680_s28, %s2027_s0 }
  0x35   : > { %p1393_p5 = scmp.ne.s32.totalorder %s1680_s28, %s1392_s12  ;;  %p1399_p12 = scmp.lt.s32.totalorder %s1397_s23, %s1392_s12 }
  0x37   : > { %p1395_p2 = pnand %p1394_p7, %p1393_p5  ;;  %p1400_p13 = por %p1399_p12, %p1398_p10 }
  0x39   : > { %p1396_p9 = pneg %p1395_p2 }
  0x3b   : > { %p1401_p0 = pnand %p1400_p13, %p1396_p9 }
  0x3d   : > { %1404 = shalt.err (!%p1401_p0)
}
  0x3e   : > { %s1405_s8 = scalar_lea.vmem %s1686_s6, 1024  ;;  %s1555_s16 = smov [#allocation2]  }
  0x3f   : > { %p1406_p1 = scmp.ne.s32.totalorder %s1686_s6, %s1405_s8  ;;  %s1410_s17 = sshll.u32 %s1555_s16, 4  ;;  %s1411_s17 = int_to_ptr.vmem [resolvable:$false] %s1410_s17 }
  0x40   : > { %s1412_s11 = scalar_lea.vmem %s1411_s17, 2048  ;;  %p1413_p6 = scmp.lt.s32.totalorder %s1686_s6, %s1411_s17 }
  0x41   : > { %p1408_p5 = pnand %p1406_p1, %p1394_p7  ;;  %p1414_p3 = scmp.lt.s32.totalorder %s1412_s11, %s1405_s8 }
  0x43   : > { %p1409_p2 = pneg %p1408_p5  ;;  %p1415_p4 = por %p1414_p3, %p1413_p6 }
  0x45   : > { %p1416_p10 = pnand %p1415_p4, %p1409_p2 }
  0x47   : > { %1419 = shalt.err (!%p1416_p10)
}
  0x48   : > { %s2029_s12 = scalar_lea.sflag [#allocation3], %s1673_s15  ;;  %s1204_s23 = sshll.u32 %s1673_s15, 3 }
  0x49   : > { %1292 = dma.hbm_to_vmem [thread:$0]  (!%p1682_p11), %s1680_s28, 1024, %s1686_s6, %s2029_s12, %s1553_s9, %s1553_s9, %s1554_s10  }
  0x4a   : > { %s1205_s27 = sshll.u32 %s1550_s21, 7  ;;  %s234_s16 = scalar_lea.vmem [#allocation5], %s1204_s23 }
  0x4b   : > { %s1724_s29 = scalar_lea.hbm %s2008_s1, %s1205_s27  ;;  %s241_s17 = sshll.u32 %s234_s16, 4  ;;  %s242_s17 = int_to_ptr.vmem [resolvable:$true] %s241_s17 }
  0x4c   : > { %s2030_s0 = sand.u32 1, %s1550_s21   ;;  %s1420_s13 = scalar_lea.hbm %s1724_s29, 128 }
  0x4d   : > { %s231_s2 = scalar_lea.sflag [#allocation6], %s2030_s0  ;;  %p1421_p1 = scmp.ne.s32.totalorder %s1724_s29, %s1420_s13 }
  0x4e   : > { %s1425_s15 = scalar_lea.hbm %s2008_s1, 256  ;;  %p1426_p3 = scmp.lt.s32.totalorder %s1724_s29, %s2008_s1 }
  0x4f   : > { %p1423_p4 = pnand %p1421_p1, %p1394_p7  ;;  %p1427_p9 = scmp.lt.s32.totalorder %s1425_s15, %s1420_s13 }
  0x51   : > { %p1424_p6 = pneg %p1423_p4  ;;  %p1428_p12 = por %p1427_p9, %p1426_p3 }
  0x53   : > { %p1429_p13 = pnand %p1428_p12, %p1424_p6 }
  0x55   : > { %1432 = shalt.err (!%p1429_p13)
}
  0x56   : > { %s1433_s12 = scalar_lea.vmem %s242_s17, 128  ;;  %s1556_s0 = smov [#allocation5]  }
  0x57   : > { %p1434_p0 = scmp.ne.s32.totalorder %s242_s17, %s1433_s12  ;;  %s1438_s23 = sshll.u32 %s1556_s0, 4  ;;  %s1439_s23 = int_to_ptr.vmem [resolvable:$false] %s1438_s23 }
  0x58   : > { %s1440_s27 = scalar_lea.vmem %s1439_s23, 256  ;;  %p1441_p10 = scmp.lt.s32.totalorder %s242_s17, %s1439_s23 }
  0x59   : > { %p1436_p5 = pnand %p1434_p0, %p1394_p7  ;;  %p1442_p1 = scmp.lt.s32.totalorder %s1440_s27, %s1433_s12 }
  0x5b   : > { %p1437_p2 = pneg %p1436_p5  ;;  %p1443_p4 = por %p1442_p1, %p1441_p10 }
  0x5d   : > { %p1444_p8 = pnand %p1443_p4, %p1437_p2 }
  0x5f   : > { %1447 = shalt.err (!%p1444_p8)
}
  0x60   : > { %1295 = dma.hbm_to_vmem [thread:$0]  (!%p1682_p11), %s1724_s29, 128, %s242_s17, %s231_s2  }
  0x61   : > { %p2031_p6 = scmp.ne.s32.totalorder %s2021_s26, 0 }
  0x62   : > { %s1749_s13 = sand.u32 (!%p2031_p6), 1, %s1542_s19   ;;  %p2032_p7 = scmp.ne.s32.totalorder (!%p2031_p6), %s2019_s24, 0 }
  0x63   : > { %250 = sbr.rel (%p2031_p6) target bundleno = 990 (0x3de), region = 36  ;;  %s1207_s8 = sshll.u32 (!%p2031_p6), %s1749_s13, 6 }
  0x64   : > { %s253_s11 = scalar_lea.sflag (!%p2031_p6), [#allocation3], %s1749_s13  ;;  %s1753_s16 = scalar_lea.vmem (!%p2031_p6), [#allocation2], %s1207_s8 }
  0x68   : > { %1517 = dma.done.wait (%p2032_p7), %s253_s11, 1024  }
  0x69   : > { %1519 = vsyncadd (%p2032_p7), %s253_s11, 4294966272  ;;  %s261_s2 = sand.u32 1, %s1611_s22   ;;  %s1761_s26 = sshll.u32 %s1749_s13, 3 }
  0x6a   : > { %s262_s7 = scalar_lea.sflag [#allocation6], %s261_s2  ;;  %s265_s29 = scalar_lea.vmem [#allocation5], %s1761_s26 }
  0x6b   : > { %1521 = dma.done.wait (%p2032_p7), %s262_s7, 128  }
  0x6c   : > { %1523 = vsyncadd (%p2032_p7), %s262_s7, 4294967168  ;;  %p2033_p8 = scmp.eq.s32.totalorder %s1611_s22, 0 }
  0x6e   : > { %1525 = dma.done.wait (%p2033_p8), [#allocation6], 256   ;;  %p2034_p11 = pmov %p2033_p8 }
  0x6f   : > { %v1343_v0 = vld [vmem:[#allocation7 + $0x8] sm:$0xff]   ;;  %v1344_v1 = vld [vmem:[#allocation7] sm:$0xff]   ;;  %v1773_v2 = vld [vmem:[%s1753_s16] sm:$0xff]   ;;  %vm380_vm0 = vcmask 261120   ;;  %v1557_v10 = vmov 1966171168   ;;  %v508_v12 = vlaneseq }
  0x70   : > { %1527 = vsyncadd (%p2034_p11), [#allocation6], 4294967040  ;;  %1249 = vmatprep.subr.bf16.mxu0 %v1343_v0  ;;  %1269 = vmatprep.subr.bf16.mxu1 %v1343_v0  ;;  %v1776_v3 = vld [vmem:[%s1753_s16 + $0x20] sm:$0xff]   ;;  %v1779_v4 = vld [vmem:[%s1753_s16 + $0x8] sm:$0xff]   ;;  %v506_v11 = vunpack.c.l.s4 %v1557_v10  ;;  %vm724_vm1 = vcmask 130112   ;;  %vm789_vm2 = vcmask 1041409  }
  0x71   : > { %1250 = vmatpush3.bf16.msra.mxu0 %v1343_v0  ;;  %1271 = vmatpush3.bf16.msra.mxu1 %v1343_v0  ;;  %v1782_v5 = vld [vmem:[%s1753_s16 + $0x28] sm:$0xff]   ;;  %v1785_v6 = vld [vmem:[%s1753_s16 + $0x10] sm:$0xff]   ;;  %v1801_v8 = vld [vmem:[%s1753_s16 + $0x18] sm:$0xff]   ;;  %v1813_v14 = vshrl.u32 %v508_v12, 7  ;;  %vm791_vm3 = vcmask 1042434   ;;  %vm793_vm4 = vcmask 1043459  }
  0x72   : > { %1251 = vmatprep.subr.bf16.mxu0 %v1344_v1  ;;  %1270 = vmatprep.subr.bf16.mxu1 %v1344_v1  ;;  %v1788_v7 = vld [vmem:[%s1753_s16 + $0x30] sm:$0xff]   ;;  %v1806_v9 = vld [vmem:[%s1753_s16 + $0x38] sm:$0xff]   ;;  %v507_v13 = vunpack.c.0.s8 %v506_v11  ;;  %v502_v15 = vld [vmem:[%s265_s29] sm:$0xff]  ;;  %vm795_vm5 = vcmask 1044484   ;;  %vm797_vm6 = vcmask 1045509   ;;  %vm799_vm7 = vcmask 1046534  }
  0x73   : > { %1253 = vmatprep.mubr.msk.bf16.mxu0 %vm380_vm0, %v1773_v2  ;;  %1261 = vmatprep.mubr.msk.bf16.mxu1 %vm380_vm0, %v1776_v3  ;;  %v504_v17 = vcombine.high %v502_v15, %v502_v15  ;;  %v1819_v23 = vsub.s32 0, %v1813_v14  ;;  %v1831_v42 = vld [vmem:[%s2010_s3] ss:$0 sm:$0xff]  ;;  %vm801_vm8 = vcmask 1047559   ;;  %vm805_vm10 = vcmask 130048   ;;  %s305_s9 = scalar_lea.vmem [#allocation9], %s1761_s26 }
  0x74   : > { %v510_v16 = vsub.s32 %v507_v13, %v1813_v14  ;;  %s1233_s10 = sshll.u32 %s1611_s22, 7  ;;  %s1062_s12 = sshll.u32 %s305_s9, 4  ;;  %s1063_s12 = int_to_ptr.vmem [resolvable:$true] %s1062_s12 }
  0x75   : > { %1252 = vmatpush3.bf16.msra.mxu0 %v1344_v1  ;;  %1272 = vmatpush3.bf16.msra.mxu1 %v1344_v1  ;;  %s1060_s6 = scalar_lea.hbm %s2012_s5, %s1233_s10  ;;  %s1036_s0 = scalar_lea.sflag [#allocation10], %s1749_s13 }
  0x76   : > { %v511_v18 = vrot.slane %v502_v15, %v510_v16  ;;  %v518_v19 = vrot.slane %v504_v17, %v510_v16  ;;  %s1448_s23 = scalar_lea.vmem %s1063_s12, 128  ;;  %p2035_p9 = scmp.ne.s32.totalorder %s2026_s14, 0 }
  0x77   : > { %p1449_p3 = scmp.ne.s32.totalorder %s1063_s12, %s1448_s23  ;;  %s1558_s27 = smov [#allocation9]  }
  0x78   : > { %1254 = vmatmul.mubr.msk.bf16.vlgmr.msra.gmra.mxu0 %vm380_vm0, %v1779_v4  ;;  %1262 = vmatmul.mubr.msk.bf16.vlgmr.msra.gmra.mxu1 %vm380_vm0, %v1782_v5  ;;  %v519_v20 = vcombine.high %v511_v18, %v511_v18  ;;  %v520_v21 = vcombine.high %v518_v19, %v518_v19  ;;  %v527_v25 = vrot.slane %v511_v18, %v510_v16  ;;  %s1452_s8 = sshll.u32 %s1558_s27, 4  ;;  %s1453_s8 = int_to_ptr.vmem [resolvable:$false] %s1452_s8 }
  0x79   : > { %1257 = vmatprep.mubr.msk.bf16.mxu0 %vm380_vm0, %v1785_v6  ;;  %1265 = vmatprep.mubr.msk.bf16.mxu1 %vm380_vm0, %v1788_v7  ;;  %v534_v26 = vrot.slane %v518_v19, %v510_v16  ;;  %p1450_p12 = pnand %p1449_p3, %p2035_p9  ;;  %s1454_s11 = scalar_lea.vmem %s1453_s8, 256 }
  0x7a   : > { %v541_v22 = vrot.slane %v519_v20, %v510_v16  ;;  %v1821_v24 = vrot.slane %v520_v21, %v510_v16  ;;  %v556_v29 = vrot.slane %v527_v25, %v1819_v23  ;;  %v549_v53 = vcombine.high %v527_v25, %v527_v25  ;;  %p1455_p0 = scmp.lt.s32.totalorder %s1063_s12, %s1453_s8  ;;  %p1456_p5 = scmp.lt.s32.totalorder %s1454_s11, %s1448_s23 }
  0x7b   : > { %v572_v30 = vrot.slane %v534_v26, %v1819_v23  ;;  %v550_v11 = vcombine.high %v534_v26, %v534_v26  ;;  %p1451_p13 = pneg %p1450_p12 }
  0x7c   : > { %v560_v27 = vrot.slane %v541_v22, %v1819_v23  ;;  %v576_v28 = vrot.slane %v1821_v24, %v1819_v23  ;;  %v551_v37 = vcombine.high %v541_v22, %v541_v22  ;;  %v564_v16 = vrot.slane %v549_v53, %v1819_v23  ;;  %p1457_p2 = por %p1456_p5, %p1455_p0 }
  0x7d   : > { %v552_v26 = vcombine.high %v1821_v24, %v1821_v24 }
  0x7e   : > { %v568_v52 = vrot.slane %v551_v37, %v1819_v23  ;;  %p1458_p10 = pnand %p1457_p2, %p1451_p13 }
  0x7f   : > { %v584_v24 = vrot.slane %v552_v26, %v1819_v23 }
  0x80   : > { %1258 = vmatmul.mubr.msk.bf16.gmra.mxu0 %vm380_vm0, %v1801_v8  ;;  %1266 = vmatmul.mubr.msk.bf16.gmra.mxu1 %vm380_vm0, %v1806_v9 }
 0x138   : > { %v1255_v31 = vpop.f32.mrf.mxu0  ;;  %v1263_v32 = vpop.f32.mrf.mxu1 }
 0x139   : > { %v595_v33 = vadd.f32 %v1255_v31, %v560_v27  ;;  %v603_v34 = vadd.f32 %v1263_v32, %v576_v28 }
 0x13a   : > { %v439_v35 = vpop.f32.mrf.mxu0  ;;  %v471_v36 = vpop.f32.mrf.mxu1 }
 0x13b   : > { %v611_v38 = vmax.f32 %v595_v33, 0.0  ;;  %v619_v39 = vmax.f32 %v603_v34, 0.0  ;;  %v593_v40 = vadd.f32 %v556_v29, %v439_v35  ;;  %v601_v41 = vadd.f32 %v572_v30, %v471_v36 }
 0x13c   : > { %v1256_v43 = vpop.f32.mrf.mxu0  ;;  %v1264_v44 = vpop.f32.mrf.mxu1 }
 0x13d   : > { %v609_v45 = vmax.f32 %v593_v40, 0.0  ;;  %v596_v46 = vadd.f32 %v1256_v43, %v560_v27  ;;  %v604_v47 = vadd.f32 %v1264_v44, %v576_v28  ;;  %v642_v50 = vmul.f32 %v1831_v42, %v619_v39 }
 0x13e   : > { %v442_v48 = vpop.f32.mrf.mxu0  ;;  %v474_v49 = vpop.f32.mrf.mxu1  ;;  %v634_v51 = vmul.f32 %v1831_v42, %v611_v38  ;;  %v617_v54 = vmax.f32 %v601_v41, 0.0 }
 0x13f   : > { %v612_v55 = vmax.f32 %v596_v46, 0.0  ;;  %v620_v56 = vmax.f32 %v604_v47, 0.0  ;;  %v602_v57 = vadd.f32 %v572_v30, %v474_v49  ;;  %v594_v58 = vadd.f32 %v556_v29, %v442_v48 }
 0x140   : > { %v678_v59 = vsel %vm380_vm0, %v642_v50, 0.0  ;;  %v654_v60 = vsel %vm380_vm0, %v634_v51, 0.0  ;;  %v1259_v61 = vpop.f32.mrf.mxu0  ;;  %v1267_v62 = vpop.f32.mrf.mxu1  ;;  %v632_v63 = vmul.f32 %v1831_v42, %v609_v45  ;;  %v640_v17 = vmul.f32 %v1831_v42, %v617_v54 }
 0x141   : > { %679 = vadd.xlane.f32.xlu0 %v678_v59  ;;  %655 = vadd.xlane.f32.xlu1 %v654_v60  ;;  %v635_v1 = vmul.f32 %v1831_v42, %v612_v55  ;;  %v618_v13 = vmax.f32 %v602_v57, 0.0  ;;  %v599_v15 = vadd.f32 %v1259_v61, %v568_v52  ;;  %v610_v18 = vmax.f32 %v594_v58, 0.0 }
 0x142   : > { %v455_v0 = vpop.f32.mrf.mxu0  ;;  %v487_v10 = vpop.f32.mrf.mxu1  ;;  %v648_v19 = vsel %vm380_vm0, %v632_v63, 0.0  ;;  %v643_v22 = vmul.f32 %v1831_v42, %v620_v56  ;;  %v580_v29 = vrot.slane %v550_v11, %v1819_v23  ;;  %v672_v32 = vsel %vm380_vm0, %v640_v17, 0.0 }
 0x143   : > { %v657_v20 = vsel %vm380_vm0, %v635_v1, 0.0  ;;  %v615_v30 = vmax.f32 %v599_v15, 0.0  ;;  %v597_v31 = vadd.f32 %v564_v16, %v455_v0  ;;  %v641_v33 = vmul.f32 %v1831_v42, %v618_v13 }
 0x144   : > { %v1260_v21 = vpop.f32.mrf.mxu0  ;;  %v1268_v27 = vpop.f32.mrf.mxu1  ;;  %v681_v36 = vsel %vm380_vm0, %v643_v22, 0.0  ;;  %v633_v37 = vmul.f32 %v1831_v42, %v610_v18  ;;  %v605_v40 = vadd.f32 %v580_v29, %v487_v10  ;;  %v607_v48 = vadd.f32 %v1267_v62, %v584_v24 }
 0x145   : > { %649 = vadd.xlane.f32.xlu0 %v648_v19  ;;  %658 = vadd.xlane.f32.xlu1 %v657_v20  ;;  %v600_v25 = vadd.f32 %v1260_v21, %v568_v52  ;;  %v613_v39 = vmax.f32 %v597_v31, 0.0  ;;  %v675_v41 = vsel %vm380_vm0, %v641_v33, 0.0  ;;  %v638_v43 = vmul.f32 %v1831_v42, %v615_v30 }
 0x146   : > { %v458_v28 = vpop.f32.mrf.mxu0  ;;  %v490_v38 = vpop.f32.mrf.mxu1  ;;  %v651_v46 = vsel %vm380_vm0, %v633_v37, 0.0  ;;  %v621_v49 = vmax.f32 %v605_v40, 0.0  ;;  %v608_v50 = vadd.f32 %v1268_v27, %v584_v24  ;;  %v623_v56 = vmax.f32 %v607_v48, 0.0 }
 0x147   : > { %v616_v34 = vmax.f32 %v600_v25, 0.0  ;;  %v598_v35 = vadd.f32 %v564_v16, %v458_v28  ;;  %v606_v45 = vadd.f32 %v580_v29, %v490_v38  ;;  %v666_v51 = vsel %vm380_vm0, %v638_v43, 0.0 }
 0x148   : > { %v636_v54 = vmul.f32 %v1831_v42, %v613_v39  ;;  %v624_v57 = vmax.f32 %v608_v50, 0.0  ;;  %v644_v60 = vmul.f32 %v1831_v42, %v621_v49  ;;  %v646_v0 = vmul.f32 %v1831_v42, %v623_v56 }
 0x149   : > { %673 = vadd.xlane.f32.xlu0 %v672_v32  ;;  %682 = vadd.xlane.f32.xlu1 %v681_v36  ;;  %v614_v44 = vmax.f32 %v598_v35, 0.0  ;;  %v639_v47 = vmul.f32 %v1831_v42, %v616_v34  ;;  %v622_v52 = vmax.f32 %v606_v45, 0.0  ;;  %v697_v18 = vand.u32 127, %v508_v12 }
 0x14a   : > { %v660_v58 = vsel %vm380_vm0, %v636_v54, 0.0  ;;  %v684_v62 = vsel %vm380_vm0, %v644_v60, 0.0  ;;  %v647_v1 = vmul.f32 %v1831_v42, %v624_v57  ;;  %v690_v10 = vsel %vm380_vm0, %v646_v0, 0.0 }
 0x14b   : > { %v669_v53 = vsel %vm380_vm0, %v639_v47, 0.0  ;;  %v637_v55 = vmul.f32 %v1831_v42, %v614_v44  ;;  %v645_v61 = vmul.f32 %v1831_v42, %v622_v52  ;;  %v719_v21 = vadd.s32 4294967288, %v697_v18 }
 0x14c   : > { %v693_v11 = vsel %vm380_vm0, %v647_v1, 0.0  ;;  %v717_v27 = vsub.s32 %v697_v18, %v1813_v14  ;;  %vm698_vm9 = vcmp.lt.s32.totalorder %v697_v18, 12 }
 0x14d   : > { %676 = vadd.xlane.f32.xlu1 %v675_v41  ;;  %652 = vadd.xlane.f32.xlu0 %v651_v46  ;;  %v663_v59 = vsel %vm380_vm0, %v637_v55, 0.0  ;;  %v687_v63 = vsel %vm380_vm0, %v645_v61, 0.0  ;;  %v722_v42 = vsub.s32 %v719_v21, %v1813_v14 }
 0x151   : > { %667 = vadd.xlane.f32.xlu0 %v666_v51  ;;  %670 = vadd.xlane.f32.xlu1 %v669_v53 }
 0x155   : > { %661 = vadd.xlane.f32.xlu0 %v660_v58  ;;  %664 = vadd.xlane.f32.xlu1 %v663_v59 }
 0x159   : > { %685 = vadd.xlane.f32.xlu0 %v684_v62  ;;  %688 = vadd.xlane.f32.xlu1 %v687_v63 }
 0x15d   : > { %691 = vadd.xlane.f32.xlu0 %v690_v10  ;;  %694 = vadd.xlane.f32.xlu1 %v693_v11 }
 0x1ca   : > { %v680_v13 = vpop.xlane.xlu0 %679  ;;  %v656_v15 = vpop.xlane.xlu1 %655 }
 0x1cb   : > { %v729_v32 = vrot.slane %v656_v15, %v717_v27  ;;  %v765_v45 = vrot.slane %v680_v13, %v717_v27 }
 0x1ce   : > { %v650_v16 = vpop.xlane.xlu0 %649  ;;  %v659_v17 = vpop.xlane.xlu1 %658 }
 0x1cf   : > { %v718_v30 = vrot.slane %v650_v16, %v717_v27  ;;  %v733_v31 = vrot.slane %v659_v17, %v722_v42 }
 0x1d1   : > { %v734_v39 = vsel %vm724_vm1, %v733_v31, %v729_v32  ;;  %v867_v32 = vsub.s32 4, %v1813_v14 }
 0x1d2   : > { %v674_v19 = vpop.xlane.xlu0 %673  ;;  %v683_v20 = vpop.xlane.xlu1 %682 }
 0x1d3   : > { %v756_v40 = vrot.slane %v674_v19, %v717_v27  ;;  %v769_v41 = vrot.slane %v683_v20, %v722_v42 }
 0x1d5   : > { %v770_v55 = vsel %vm724_vm1, %v769_v41, %v765_v45 }
 0x1d6   : > { %v677_v22 = vpop.xlane.xlu1 %676  ;;  %v653_v25 = vpop.xlane.xlu0 %652 }
 0x1d7   : > { %v723_v26 = vrot.slane %v653_v25, %v722_v42  ;;  %v760_v37 = vrot.slane %v677_v22, %v722_v42 }
 0x1d9   : > { %v725_v33 = vsel %vm724_vm1, %v723_v26, %v718_v30  ;;  %v761_v50 = vsel %vm724_vm1, %v760_v37, %v756_v40  ;;  %v845_v26 = vsub.s32 2, %v1813_v14  ;;  %v856_v30 = vsub.s32 3, %v1813_v14 }
 0x1da   : > { %v668_v28 = vpop.xlane.xlu0 %667  ;;  %v671_v29 = vpop.xlane.xlu1 %670  ;;  %v790_v43 = vsel %vm789_vm2, %v734_v39, %v725_v33  ;;  %v878_v33 = vsub.s32 5, %v1813_v14 }
 0x1db   : > { %v747_v12 = vrot.slane %v668_v28, %v717_v27  ;;  %v751_v34 = vrot.slane %v671_v29, %v722_v42 }
 0x1dd   : > { %v752_v46 = vsel %vm724_vm1, %v751_v34, %v747_v12  ;;  %v889_v34 = vsub.s32 6, %v1813_v14 }
 0x1de   : > { %v662_v35 = vpop.xlane.xlu0 %661  ;;  %v665_v36 = vpop.xlane.xlu1 %664 }
 0x1df   : > { %v738_v38 = vrot.slane %v662_v35, %v717_v27  ;;  %v742_v24 = vrot.slane %v665_v36, %v722_v42  ;;  %v900_v36 = vsub.s32 7, %v1813_v14 }
 0x1e1   : > { %v743_v44 = vsel %vm724_vm1, %v742_v24, %v738_v38 }
 0x1e2   : > { %v792_v47 = vsel %vm791_vm3, %v743_v44, %v790_v43  ;;  %v686_v48 = vpop.xlane.xlu0 %685  ;;  %v689_v49 = vpop.xlane.xlu1 %688 }
 0x1e3   : > { %v794_v51 = vsel %vm793_vm4, %v752_v46, %v792_v47  ;;  %v774_v52 = vrot.slane %v686_v48, %v717_v27  ;;  %v778_v53 = vrot.slane %v689_v49, %v722_v42 }
 0x1e4   : > { %v796_v54 = vsel %vm795_vm5, %v761_v50, %v794_v51 }
 0x1e5   : > { %v779_v56 = vsel %vm724_vm1, %v778_v53, %v774_v52  ;;  %v798_v59 = vsel %vm797_vm6, %v770_v55, %v796_v54 }
 0x1e6   : > { %v692_v57 = vpop.xlane.xlu0 %691  ;;  %v695_v58 = vpop.xlane.xlu1 %694  ;;  %v800_v63 = vsel %vm799_vm7, %v779_v56, %v798_v59 }
 0x1e7   : > { %v783_v60 = vrot.slane %v692_v57, %v717_v27  ;;  %v787_v61 = vrot.slane %v695_v58, %v722_v42  ;;  %v834_v27 = vsub.s32 1, %v1813_v14 }
 0x1e9   : > { %v788_v62 = vsel %vm724_vm1, %v787_v61, %v783_v60 }
 0x1ea   : > { %v802_v0 = vsel %vm801_vm8, %v788_v62, %v800_v63 }
 0x1eb   : > { %v804_v1 = vsel %vm698_vm9, %v802_v0, -1e+30 }
 0x1ec   : > { %v806_v10 = vsel %vm805_vm10, %v804_v1, -inf }
 0x1ed   : > { %807 = vmax.xlane.f32.xlu0 %v806_v10 }
 0x276   : > { %v808_v11 = vpop.xlane.xlu0 %807 }
 0x277   : > { %v809_v13 = vsub.f32 %v804_v1, %v808_v11 }
 0x279   : > { %v810_v15 = vmul.f32 1.442695, %v809_v13 }
 0x27b   : > { %1362 = vpow2.f32 %v810_v15 }
 0x288   : > { %v1363_v16 = vpop.eup %1362 }
 0x289   : > { %v812_v17 = vsel %vm805_vm10, %v1363_v16, 0.0 }
 0x28a   : > { %813 = vadd.xlane.f32.xlu1 %v812_v17 }
 0x313   : > { %v814_v18 = vpop.xlane.xlu1 %813 }
 0x314   : > { %1364 = vrcp.f32 %v814_v18 }
 0x321   : > { %v1365_v19 = vpop.eup %1364 }
 0x322   : > { %v816_v20 = vmul.f32 %v1365_v19, %v814_v18 }
 0x324   : > { %v817_v21 = vsub.f32 2.0, %v816_v20 }
 0x326   : > { %v818_v22 = vmul.f32 %v1365_v19, %v817_v21 }
 0x328   : > { %v819_v25 = vmul.f32 %v1363_v16, %v818_v22 }
 0x32a   : > { %v824_v42 = vrot.slane %v819_v25, %v1819_v23  ;;  %820 = vst.msk [vmem:[%s305_s9] sm:$0xff] %vm805_vm10, %v819_v25  ;;  %v835_v28 = vrot.slane %v819_v25, %v834_v27  ;;  %v846_v29 = vrot.slane %v819_v25, %v845_v26  ;;  %v857_v31 = vrot.slane %v819_v25, %v856_v30 }
 0x32b   : > { %v868_v23 = vrot.slane %v819_v25, %v867_v32  ;;  %v879_v12 = vrot.slane %v819_v25, %v878_v33  ;;  %v890_v35 = vrot.slane %v819_v25, %v889_v34  ;;  %v901_v37 = vrot.slane %v819_v25, %v900_v36 }
 0x32c   : > { %830 = vbcast.lane.b32.xlu1 %v824_v42, 264  ;;  %826 = vbcast.lane.b32.xlu0 %v824_v42, 256 }
 0x330   : > { %837 = vbcast.lane.b32.xlu1 %v835_v28, 256  ;;  %848 = vbcast.lane.b32.xlu0 %v846_v29, 256 }
 0x334   : > { %841 = vbcast.lane.b32.xlu1 %v835_v28, 264  ;;  %859 = vbcast.lane.b32.xlu0 %v857_v31, 256 }
 0x338   : > { %852 = vbcast.lane.b32.xlu1 %v846_v29, 264  ;;  %870 = vbcast.lane.b32.xlu0 %v868_v23, 256 }
 0x33c   : > { %863 = vbcast.lane.b32.xlu1 %v857_v31, 264  ;;  %881 = vbcast.lane.b32.xlu0 %v879_v12, 256 }
 0x340   : > { %874 = vbcast.lane.b32.xlu1 %v868_v23, 264  ;;  %892 = vbcast.lane.b32.xlu0 %v890_v35, 256 }
 0x344   : > { %885 = vbcast.lane.b32.xlu1 %v879_v12, 264  ;;  %903 = vbcast.lane.b32.xlu0 %v901_v37, 256 }
 0x348   : > { %896 = vbcast.lane.b32.xlu1 %v890_v35, 264 }
 0x34c   : > { %907 = vbcast.lane.b32.xlu1 %v901_v37, 264 }
 0x34d   : > { %1461 = shalt.err (!%p1458_p10)
}
 0x34e   : > { %s1462_s16 = scalar_lea.hbm %s1060_s6, 128  ;;  %s1466_s29 = scalar_lea.hbm %s2012_s5, 256 }
 0x34f   : > { %p1463_p1 = scmp.ne.s32.totalorder %s1060_s6, %s1462_s16  ;;  %p1467_p7 = scmp.lt.s32.totalorder %s1060_s6, %s2012_s5 }
 0x350   : > { %p1468_p8 = scmp.lt.s32.totalorder %s1466_s29, %s1462_s16 }
 0x351   : > { %p1464_p4 = pnand %p1463_p1, %p2035_p9 }
 0x352   : > { %p1469_p11 = por %p1468_p8, %p1467_p7 }
 0x353   : > { %p1465_p6 = pneg %p1464_p4 }
 0x355   : > { %p1470_p3 = pnand %p1469_p11, %p1465_p6 }
 0x357   : > { %1473 = shalt.err (!%p1470_p3)
}
 0x358   : > { %1282 = dma.vmem_to_hbm [thread:$0]  (%p2035_p9), %s1063_s12, 128, %s1060_s6, %s1036_s0   ;;  %v912_v40 = vunpack.c.h.bf16 %v1779_v4  ;;  %v910_v41 = vunpack.c.h.bf16 %v1773_v2  ;;  %v909_v43 = vunpack.c.l.bf16 %v1773_v2  ;;  %v911_v44 = vunpack.c.l.bf16 %v1779_v4 }
 0x359   : > { %v913_v45 = vunpack.c.l.bf16 %v1785_v6  ;;  %v914_v49 = vunpack.c.h.bf16 %v1785_v6  ;;  %v915_v53 = vunpack.c.l.bf16 %v1801_v8  ;;  %v916_v4 = vunpack.c.h.bf16 %v1801_v8  ;;  %s298_s9 = scalar_lea.vmem [#allocation8], %s1761_s26  ;;  %s1968_s12 = scalar_lea.hbm %s2011_s4, %s1233_s10 }
 0x35a   : > { %v917_v59 = vunpack.c.l.bf16 %v1776_v3  ;;  %v918_v8 = vunpack.c.h.bf16 %v1776_v3  ;;  %v919_v19 = vunpack.c.l.bf16 %v1782_v5  ;;  %v920_v27 = vunpack.c.h.bf16 %v1782_v5  ;;  %s1049_s15 = sshll.u32 %s298_s9, 4  ;;  %s1031_s26 = scalar_lea.sflag [#allocation4], %s1749_s13  ;;  %s1050_s15 = int_to_ptr.vmem [resolvable:$true] %s1049_s15 }
 0x35b   : > { %v921_v32 = vunpack.c.l.bf16 %v1788_v7  ;;  %v922_v36 = vunpack.c.h.bf16 %v1788_v7  ;;  %s1474_s0 = scalar_lea.vmem %s1050_s15, 128  ;;  %s1559_s23 = smov [#allocation8]  }
 0x35c   : > { %p1475_p12 = scmp.ne.s32.totalorder %s1050_s15, %s1474_s0  ;;  %s1478_s27 = sshll.u32 %s1559_s23, 4  ;;  %s1479_s27 = int_to_ptr.vmem [resolvable:$false] %s1478_s27 }
 0x35d   : > { %s1480_s22 = scalar_lea.vmem %s1479_s27, 256  ;;  %p1481_p5 = scmp.lt.s32.totalorder %s1050_s15, %s1479_s27 }
 0x35e   : > { %p1476_p13 = pnand %p1475_p12, %p2035_p9  ;;  %p1482_p2 = scmp.lt.s32.totalorder %s1480_s22, %s1474_s0 }
 0x360   : > { %p1477_p0 = pneg %p1476_p13  ;;  %p1483_p10 = por %p1482_p2, %p1481_p5 }
 0x362   : > { %p1484_p1 = pnand %p1483_p10, %p1477_p0 }
 0x39e   : > { %v831_v14 = vpop.permute.xlu1 %830  ;;  %v827_v38 = vpop.permute.xlu0 %826 }
 0x39f   : > { %v926_v50 = vmul.f32 %v910_v41, %v831_v14  ;;  %v925_v51 = vmul.f32 %v909_v43, %v827_v38 }
 0x3a1   : > { %v942_v58 = vsel %vm380_vm0, %v926_v50, 0.0  ;;  %v941_v60 = vsel %vm380_vm0, %v925_v51, 0.0 }
 0x3a2   : > { %v838_v24 = vpop.permute.xlu1 %837  ;;  %v849_v39 = vpop.permute.xlu0 %848  ;;  %v943_v15 = vadd.f32 %v942_v58, %v941_v60 }
 0x3a3   : > { %v927_v52 = vmul.f32 %v911_v44, %v838_v24  ;;  %v929_v54 = vmul.f32 %v913_v45, %v849_v39 }
 0x3a4   : > { %v944_v26 = vrot.slane %v943_v15, 4 }
 0x3a5   : > { %v950_v6 = vsel %vm380_vm0, %v927_v52, 0.0  ;;  %v959_v63 = vsel %vm380_vm0, %v929_v54, 0.0 }
 0x3a6   : > { %v842_v46 = vpop.permute.xlu1 %841  ;;  %v860_v47 = vpop.permute.xlu0 %859  ;;  %v945_v37 = vadd.f32 %v944_v26, %v943_v15 }
 0x3a7   : > { %v928_v48 = vmul.f32 %v912_v40, %v842_v46  ;;  %v931_v61 = vmul.f32 %v915_v53, %v860_v47  ;;  %v923_v40 = vunpack.c.l.bf16 %v1806_v9 }
 0x3a8   : > { %v946_v7 = vrot.slane %v945_v37, 2 }
 0x3a9   : > { %v951_v57 = vsel %vm380_vm0, %v928_v48, 0.0  ;;  %v968_v16 = vsel %vm380_vm0, %v931_v61, 0.0 }
 0x3aa   : > { %v853_v55 = vpop.permute.xlu1 %852  ;;  %v871_v56 = vpop.permute.xlu0 %870  ;;  %v952_v0 = vadd.f32 %v951_v57, %v950_v6  ;;  %v947_v60 = vadd.f32 %v946_v7, %v945_v37 }
 0x3ab   : > { %v930_v2 = vmul.f32 %v914_v49, %v853_v55  ;;  %v933_v17 = vmul.f32 %v917_v59, %v871_v56  ;;  %v924_v49 = vunpack.c.h.bf16 %v1806_v9 }
 0x3ac   : > { %v953_v20 = vrot.slane %v952_v0, 4  ;;  %v948_v15 = vrot.slane %v947_v60, 1 }
 0x3ad   : > { %v960_v62 = vsel %vm380_vm0, %v930_v2, 0.0  ;;  %v977_v3 = vsel %vm380_vm0, %v933_v17, 0.0 }
 0x3ae   : > { %v864_v1 = vpop.permute.xlu1 %863  ;;  %v882_v10 = vpop.permute.xlu0 %881  ;;  %v961_v11 = vadd.f32 %v960_v62, %v959_v63  ;;  %v954_v23 = vadd.f32 %v953_v20, %v952_v0 }
 0x3af   : > { %v932_v13 = vmul.f32 %v916_v4, %v864_v1  ;;  %v935_v30 = vmul.f32 %v919_v19, %v882_v10 }
 0x3b0   : > { %v962_v25 = vrot.slane %v961_v11, 4  ;;  %v955_v41 = vrot.slane %v954_v23, 2 }
 0x3b1   : > { %v969_v18 = vsel %vm380_vm0, %v932_v13, 0.0  ;;  %v986_v38 = vsel %vm380_vm0, %v935_v30, 0.0 }
 0x3b2   : > { %v970_v21 = vadd.f32 %v969_v18, %v968_v16  ;;  %v875_v22 = vpop.permute.xlu1 %874  ;;  %v893_v29 = vpop.permute.xlu0 %892  ;;  %v963_v34 = vadd.f32 %v962_v25, %v961_v11  ;;  %v956_v56 = vadd.f32 %v955_v41, %v954_v23 }
 0x3b3   : > { %v934_v42 = vmul.f32 %v918_v8, %v875_v22  ;;  %v937_v24 = vmul.f32 %v921_v32, %v893_v29 }
 0x3b4   : > { %v971_v28 = vrot.slane %v970_v21, 4  ;;  %v964_v47 = vrot.slane %v963_v34, 2  ;;  %v957_v1 = vrot.slane %v956_v56, 1 }
 0x3b5   : > { %v978_v31 = vsel %vm380_vm0, %v934_v42, 0.0  ;;  %v995_v53 = vsel %vm380_vm0, %v937_v24, 0.0 }
 0x3b6   : > { %v979_v33 = vadd.f32 %v978_v31, %v977_v3  ;;  %v886_v12 = vpop.permute.xlu1 %885  ;;  %v972_v14 = vadd.f32 %v971_v28, %v970_v21  ;;  %v904_v45 = vpop.permute.xlu0 %903  ;;  %v965_v58 = vadd.f32 %v964_v47, %v963_v34  ;;  %v958_v20 = vadd.f32 %v957_v1, %v956_v56 }
 0x3b7   : > { %v936_v35 = vmul.f32 %v920_v27, %v886_v12  ;;  %v939_v54 = vmul.f32 %v923_v40, %v904_v45  ;;  %v949_v27 = vadd.f32 %v948_v15, %v947_v60 }
 0x3b8   : > { %v980_v5 = vrot.slane %v979_v33, 4  ;;  %v973_v50 = vrot.slane %v972_v14, 2  ;;  %v966_v8 = vrot.slane %v965_v58, 1 }
 0x3b9   : > { %v987_v39 = vsel %vm380_vm0, %v936_v35, 0.0  ;;  %v1004_v63 = vsel %vm380_vm0, %v939_v54, 0.0  ;;  %v1021_v30 = vsel %vm789_vm2, %v958_v20, %v949_v27 }
 0x3ba   : > { %v981_v43 = vadd.f32 %v980_v5, %v979_v33  ;;  %v988_v44 = vadd.f32 %v987_v39, %v986_v38  ;;  %v897_v46 = vpop.permute.xlu1 %896  ;;  %v974_v6 = vadd.f32 %v973_v50, %v972_v14  ;;  %v967_v42 = vadd.f32 %v966_v8, %v965_v58 }
 0x3bb   : > { %v938_v48 = vmul.f32 %v922_v36, %v897_v46 }
 0x3bc   : > { %v989_v51 = vrot.slane %v988_v44, 4  ;;  %v982_v52 = vrot.slane %v981_v43, 2  ;;  %v975_v16 = vrot.slane %v974_v6, 1  ;;  %v1022_v23 = vsel %vm791_vm3, %v967_v42, %v1021_v30 }
 0x3bd   : > { %v996_v55 = vsel %vm380_vm0, %v938_v48, 0.0 }
 0x3be   : > { %v990_v57 = vadd.f32 %v989_v51, %v988_v44  ;;  %v997_v2 = vadd.f32 %v996_v55, %v995_v53  ;;  %v908_v4 = vpop.permute.xlu1 %907  ;;  %v983_v9 = vadd.f32 %v982_v52, %v981_v43  ;;  %v976_v26 = vadd.f32 %v975_v16, %v974_v6 }
 0x3bf   : > { %v940_v59 = vmul.f32 %v924_v49, %v908_v4 }
 0x3c0   : > { %v991_v61 = vrot.slane %v990_v57, 2  ;;  %v998_v62 = vrot.slane %v997_v2, 4  ;;  %v984_v19 = vrot.slane %v983_v9, 1  ;;  %v1023_v12 = vsel %vm793_vm4, %v976_v26, %v1022_v23 }
 0x3c1   : > { %v1005_v0 = vsel %vm380_vm0, %v940_v59, 0.0 }
 0x3c2   : > { %v992_v10 = vadd.f32 %v991_v61, %v990_v57  ;;  %v999_v11 = vadd.f32 %v998_v62, %v997_v2  ;;  %v1006_v13 = vadd.f32 %v1005_v0, %v1004_v63  ;;  %v985_v3 = vadd.f32 %v984_v19, %v983_v9 }
 0x3c4   : > { %v1000_v17 = vrot.slane %v999_v11, 2  ;;  %v1007_v18 = vrot.slane %v1006_v13, 4  ;;  %v993_v21 = vrot.slane %v992_v10, 1  ;;  %v1024_v35 = vsel %vm795_vm5, %v985_v3, %v1023_v12 }
 0x3c6   : > { %v1001_v22 = vadd.f32 %v1000_v17, %v999_v11  ;;  %v1008_v25 = vadd.f32 %v1007_v18, %v1006_v13  ;;  %v994_v31 = vadd.f32 %v993_v21, %v992_v10 }
 0x3c8   : > { %v1002_v28 = vrot.slane %v1001_v22, 1  ;;  %v1009_v29 = vrot.slane %v1008_v25, 2  ;;  %v1025_v36 = vsel %vm797_vm6, %v994_v31, %v1024_v35 }
 0x3ca   : > { %v1010_v32 = vadd.f32 %v1009_v29, %v1008_v25  ;;  %v1003_v33 = vadd.f32 %v1002_v28, %v1001_v22 }
 0x3cc   : > { %v1011_v34 = vrot.slane %v1010_v32, 1  ;;  %v1026_v14 = vsel %vm799_vm7, %v1003_v33, %v1025_v36 }
 0x3ce   : > { %v1012_v37 = vadd.f32 %v1011_v34, %v1010_v32 }
 0x3d0   : > { %v1027_v5 = vsel %vm801_vm8, %v1012_v37, %v1026_v14 }
 0x3d1   : > { %1029 = vst.msk [vmem:[%s298_s9] sm:$0xff] %vm380_vm0, %v1027_v5 }
 0x3d2   : > { %1487 = shalt.err (!%p1484_p1)
}
 0x3d3   : > { %s1488_s10 = scalar_lea.hbm %s1968_s12, 128  ;;  %s1492_s11 = scalar_lea.hbm %s2011_s4, 256 }
 0x3d4   : > { %p1489_p4 = scmp.ne.s32.totalorder %s1968_s12, %s1488_s10  ;;  %p1493_p8 = scmp.lt.s32.totalorder %s1968_s12, %s2011_s4 }
 0x3d5   : > { %p1494_p11 = scmp.lt.s32.totalorder %s1492_s11, %s1488_s10 }
 0x3d6   : > { %p1490_p6 = pnand %p1489_p4, %p2035_p9 }
 0x3d7   : > { %p1495_p3 = por %p1494_p11, %p1493_p8 }
 0x3d8   : > { %p1491_p7 = pneg %p1490_p6 }
 0x3da   : > { %p1496_p12 = pnand %p1495_p3, %p1491_p7 }
 0x3dc   : > { %1499 = shalt.err (!%p1496_p12)
}
 0x3dd   : > { %1281 = dma.vmem_to_hbm [thread:$0]  (%p2035_p9), %s1050_s15, 128, %s1968_s12, %s1031_s26  }
 0x3de PF: > { %s1074_s7 = sand.u32 1, %s1538_s18   ;;  %p2036_p13 = scmp.ne.s32.totalorder %s2020_s25, 0 }
 0x3df   : > { %p2037_p0 = scmp.ge.s32.totalorder %s1550_s21, 2  ;;  %s1075_s29 = scalar_lea.sflag [#allocation4], %s1074_s7 }
 0x3e1   : > { %p1297_p5 = pnand %p2037_p0, %p2036_p13 }
 0x3e3   : > { %p1298_p2 = pneg %p1297_p5 }
 0x3e5   : > { %1529 = dma.done.wait (%p1298_p2), %s1075_s29, 128  }
 0x3e6   : > { %1531 = vsyncadd (%p1298_p2), %s1075_s29, 4294967168  ;;  %s1084_s24 = scalar_lea.sflag [#allocation10], %s1074_s7 }
 0x3e7   : > { %1533 = dma.done.wait (%p1298_p2), %s1084_s24, 128  }
 0x3e8   : > { %1535 = vsyncadd (%p1298_p2), %s1084_s24, 4294967168  ;;  %s2038_s14 = sld [smem:[#allocation16_spill]]  ;;  %p25_p9 = scmp.ge.s32.totalorder %s1644_s30, 4  }
 0x3e9   : > { %s2039_s18 = smov %s1542_s19  ;;  %s2040_s19 = smov %s1546_s20 }
 0x3ea   : > { %s2042_s21 = smov %s1644_s30  ;;  %27 = sbr.rel (!%p25_p9) target bundleno = 12 (0xc), region = 115 }
 0x3ee   : > { %s2041_s20 = smov %s2038_s14 }
 0x3ef   :  { %1089 = vsyncpa [#allocation3], 1 }
 0x3f0   :  { %1091 = vsyncpa [#allocation3 + $0x1], 1 }
 0x3f1   :  { %1092 = vsyncpa [#allocation6], 1 }
 0x3f2   :  { %1094 = vsyncpa [#allocation6 + $0x1], 1 }
 0x3f3   :  { %1095 = vsyncpa [#allocation4], 1 }
 0x3f4   :  { %1097 = vsyncpa [#allocation4 + $0x1], 1 }
 0x3f5   :  { %1098 = vsyncpa [#allocation10], 1 }
 0x3f6   :  { %1100 = vsyncpa [#allocation10 + $0x1], 1 }

</bundles_post_ra>
